<compile_context>
chip_gen: v7x
topology: tpu7x:2x2x1
jax: 0.10.0
libtpu: 0.0.40
codegen_flags: <defaults>
</compile_context>

<pallas_src>
import functools
import math

import numpy as np

import jax
import jax.numpy as jnp
from jax.experimental import pallas as pl
from jax.experimental.pallas import tpu as pltpu


LANE = 128            # lane (last-dim) tiling quantum
SUBLANE = 8           # sublane (second-minor) tiling quantum
NEG_BIG = -3.0e38     # finite "-inf" for the masked max pool

TILE_M = 512          # A row-tile (multiple of 8; 512-1024 recommended)
TILE_K = 512          # A col-tile / reduction tile (multiple of 128; >=256 for v6e/v7x MXU)

# Safe on all generations: <= v7x 64 MiB physical, >> actual ~2-3 MB footprint.
VMEM_LIMIT_BYTES = 32 * 1024 * 1024


def _round_up(x, m):
    return ((x + m - 1) // m) * m


# ----------------------------------------------------------------------------
# Kernels
# ----------------------------------------------------------------------------

def _layer_kernel(k_lo_ref, k_hi_ref, a_ref, h_ref, w_ref, b_ref, out_ref, acc_ref):
    """out[i] = tanh(sum_k A[i,k] @ (H[k] @ W) + b), skipping all-zero A tiles.

    A, H, W are bf16 MXU inputs; accumulation stays f32 in acc_ref (out may be
    bf16, so we keep the f32 scratch rather than accumulating into out_ref).
    """
    i = pl.program_id(0)
    k = pl.program_id(1)

    @pl.when(k == 0)
    def _():
        acc_ref[...] = jnp.zeros_like(acc_ref)

    # Only accumulate for column tiles inside this row-tile's nonzero band.
    @pl.when(k_lo_ref[i] + k <= k_hi_ref[i])
    def _():
        hw = jnp.dot(h_ref[...], w_ref[...],
                     preferred_element_type=jnp.float32).astype(jnp.bfloat16)
        acc_ref[...] += jnp.dot(a_ref[...], hw,
                                preferred_element_type=jnp.float32)

    @pl.when(k == pl.num_programs(1) - 1)
    def _():
        out_ref[...] = jnp.tanh(acc_ref[...] + b_ref[...]).astype(out_ref.dtype)


def _pool_kernel(h_ref, mask_ref, mask_t_ref, max_ref, sum_ref):
    """Per 8-graph group: accumulate sum (MXU, bf16 operands) and masked max
    over one node tile.  Unroll is fixed at 8 graphs; tile maxima are built
    locally and stored with a single (8, C) write."""
    k = pl.program_id(1)

    @pl.when(k == 0)
    def _():
        max_ref[...] = jnp.full_like(max_ref, NEG_BIG)
        sum_ref[...] = jnp.zeros_like(sum_ref)

    h = h_ref[...]                                            # (TM, C) f32
    # mean-pool numerator: (8, TM) @ (TM, C) on the MXU, bf16 operands.
    sum_ref[...] += jnp.dot(mask_ref[...].astype(jnp.bfloat16),
                            h.astype(jnp.bfloat16),
                            preferred_element_type=jnp.float32)

    selt = mask_t_ref[0] > 0.0                                # (TM, 8) bool
    rows = []
    for g in range(SUBLANE):                                  # static unroll of 8
        col = selt[:, g:g + 1]                                # (TM, 1)
        rows.append(jnp.max(jnp.where(col, h, NEG_BIG), axis=0, keepdims=True))
    tile_max = jnp.concatenate(rows, axis=0)                  # (8, C)
    max_ref[...] = jnp.maximum(max_ref[...], tile_max)        # single store


# ----------------------------------------------------------------------------
# pallas_call wrappers
# ----------------------------------------------------------------------------

def _gcn_layer(a_bf16, h_bf16, w_bf16, b_f32, k_lo, k_hi, band,
               tm, tk, c, n_pad, out_dtype):
    r = n_pad // tm

    def a_map(i, k, lo, hi):
        return (i, jnp.minimum(lo[i] + k, hi[i]))

    def h_map(i, k, lo, hi):
        return (jnp.minimum(lo[i] + k, hi[i]), 0)

    grid_spec = pltpu.PrefetchScalarGridSpec(
        num_scalar_prefetch=2,
        grid=(r, band),
        in_specs=[pl.BlockSpec((tm, tk), a_map),
                  pl.BlockSpec((tk, c), h_map),
                  pl.BlockSpec((c, c), lambda i, k, lo, hi: (0, 0)),
                  pl.BlockSpec((1, c), lambda i, k, lo, hi: (0, 0))],
        out_specs=pl.BlockSpec((tm, c), lambda i, k, lo, hi: (i, 0)),
        scratch_shapes=[pltpu.VMEM((tm, c), jnp.float32)])

    out_bytes = n_pad * c * jnp.dtype(out_dtype).itemsize
    return pl.pallas_call(
        _layer_kernel,
        out_shape=jax.ShapeDtypeStruct((n_pad, c), out_dtype),
        grid_spec=grid_spec,
        compiler_params=pltpu.CompilerParams(
            dimension_semantics=("parallel", "arbitrary"),
            vmem_limit_bytes=VMEM_LIMIT_BYTES),
        cost_estimate=pl.CostEstimate(
            flops=2 * r * band * (tk * c * c + tm * tk * c),
            transcendentals=n_pad * c,
            bytes_accessed=int(r * band * (tm * tk * 2 + tk * c * 2)
                               + c * c * 2 + c * 4 + out_bytes)),
    )(k_lo, k_hi, a_bf16, h_bf16, w_bf16, b_f32)


def _pool(h, mask, mask_t3, g_pad, tm, c, n_pad):
    kt = n_pad // tm
    g_tiles = g_pad // SUBLANE
    return pl.pallas_call(
        _pool_kernel,
        out_shape=(jax.ShapeDtypeStruct((g_pad, c), jnp.float32),
                   jax.ShapeDtypeStruct((g_pad, c), jnp.float32)),
        grid=(g_tiles, kt),
        in_specs=[pl.BlockSpec((tm, c), lambda gi, k: (k, 0)),
                  pl.BlockSpec((SUBLANE, tm), lambda gi, k: (gi, k)),
                  pl.BlockSpec((1, tm, SUBLANE), lambda gi, k: (gi, k, 0))],
        out_specs=(pl.BlockSpec((SUBLANE, c), lambda gi, k: (gi, 0)),
                   pl.BlockSpec((SUBLANE, c), lambda gi, k: (gi, 0))),
        compiler_params=pltpu.CompilerParams(
            dimension_semantics=("parallel", "arbitrary"),
            vmem_limit_bytes=VMEM_LIMIT_BYTES),
        cost_estimate=pl.CostEstimate(
            flops=2 * g_pad * n_pad * c + 2 * n_pad * c,
            transcendentals=0,
            bytes_accessed=int(g_tiles * n_pad * c * 4
                               + 2 * g_pad * n_pad * 4 + 2 * g_pad * c * 4)),
    )(h, mask, mask_t3)


# ----------------------------------------------------------------------------
# Host-side structure tables (numpy — no device sync, cheap)
# ----------------------------------------------------------------------------

def _band_table(edge_index_np, n, n_pad, tm, tk):
    """Per row-tile [k_lo, k_hi] column-tile band of A_hat's nonzero structure."""
    r = n_pad // tm
    kt = n_pad // tk
    src = np.asarray(edge_index_np[0], dtype=np.int64)
    dst = np.asarray(edge_index_np[1], dtype=np.int64)
    diag = np.arange(n, dtype=np.int64)                    # self loops
    rows = np.concatenate([dst, diag])
    cols = np.concatenate([src, diag])
    lo = np.full(r, kt - 1, dtype=np.int64)
    hi = np.zeros(r, dtype=np.int64)
    np.minimum.at(lo, rows // tm, cols // tk)
    np.maximum.at(hi, rows // tm, cols // tk)
    lo = np.minimum(lo, hi)                                 # all-padding tiles -> [0, 0]
    band = int((hi - lo).max()) + 1
    return (jnp.asarray(lo, dtype=jnp.int32),
            jnp.asarray(hi, dtype=jnp.int32), band)


# ----------------------------------------------------------------------------
# Plain-JAX glue (adjacency construction, params, wrapper, references)
# ----------------------------------------------------------------------------

def build_norm_adj(edge_index, edge_weight, num_nodes, improved):
    """Dense GCN-normalized adjacency (matches PyG gcn_norm with self-loops)."""
    src = edge_index[0]
    dst = edge_index[1]
    if edge_weight is None:
        edge_weight = jnp.ones(src.shape[0], dtype=jnp.float32)
    A = jnp.zeros((num_nodes, num_nodes), jnp.float32)
    A = A.at[dst, src].add(edge_weight)
    fill = 2.0 if improved else 1.0
    A = A + fill * jnp.eye(num_nodes, dtype=jnp.float32)
    deg = A.sum(axis=1)
    dinv = jnp.where(deg > 0.0, jax.lax.rsqrt(deg), 0.0)
    return dinv[:, None] * A * dinv[None, :]


def init_params(num_features, embedding_size, gnn_layers, seed=23):
    key = jax.random.PRNGKey(seed)
    k0, k1, k2, k3 = jax.random.split(key, 4)
    F, E, L = num_features, embedding_size, gnn_layers
    return {
        "w0": jax.random.normal(k0, (F, E), jnp.float32) / math.sqrt(F),
        "b0": jnp.zeros((1, E), jnp.float32),
        "wl": jax.random.normal(k1, (L - 1, E, E), jnp.float32) / math.sqrt(E),
        "bl": jnp.zeros((L - 1, 1, E), jnp.float32),
        "w_out": jax.random.normal(k2, (2 * E, 1), jnp.float32) / math.sqrt(2 * E),
        "b_out": 0.1 * jax.random.normal(k3, (1, 1), jnp.float32),
    }


def gcn_loop_forward(params, x, edge_index, batch_index, edge_weight=None,
                     improved=True, num_graphs=None,
                     tile_m=TILE_M, tile_k=TILE_K):
    x = jnp.asarray(x, jnp.float32)
    N, F = x.shape
    E = params["w0"].shape[1]
    num_hidden = params["wl"].shape[0]

    # Structure tables on the host (cheap numpy; avoids device->host syncs).
    edge_index_np = np.asarray(edge_index)
    batch_np = np.asarray(batch_index)
    G = int(batch_np.max()) + 1 if num_graphs is None else int(num_graphs)

    # Lane/sublane-dense padded sizes.
    C = _round_up(max(F, E), LANE)                     # feature width -> 128
    tm = _round_up(tile_m, SUBLANE)
    tk = _round_up(tile_k, LANE)
    n_pad = _round_up(N, math.lcm(tm, tk))
    g_pad = _round_up(max(G, SUBLANE), SUBLANE)
    g_tiles = g_pad // SUBLANE

    k_lo, k_hi, band = _band_table(edge_index_np, N, n_pad, tm, tk)

    # Dense normalized adjacency, padded directly into bf16 for the MXU.
    a = build_norm_adj(edge_index, edge_weight, N, improved)
    a_bf16 = jnp.zeros((n_pad, n_pad), jnp.bfloat16).at[:N, :N].set(
        a.astype(jnp.bfloat16))

    # Padded node features (bf16 MXU input) and per-layer (bf16 W, f32 b).
    h = jnp.zeros((n_pad, C), jnp.bfloat16).at[:N, :F].set(x.astype(jnp.bfloat16))
    layer_w = [jnp.zeros((C, C), jnp.float32).at[:F, :E]
               .set(params["w0"]).astype(jnp.bfloat16)]
    layer_b = [jnp.zeros((1, C), jnp.float32).at[:, :E].set(params["b0"])]
    for i in range(num_hidden):
        layer_w.append(jnp.zeros((C, C), jnp.float32).at[:E, :E]
                       .set(params["wl"][i]).astype(jnp.bfloat16))
        layer_b.append(jnp.zeros((1, C), jnp.float32).at[:, :E].set(params["bl"][i]))

    # Fused GCN layers: H <- tanh(A_hat @ (H @ W) + b).  Intermediate H in
    # bf16; final layer (feeds the pool) in f32.
    n_layers = 1 + num_hidden
    for li in range(n_layers):
        out_dtype = jnp.float32 if li == n_layers - 1 else jnp.bfloat16
        h = _gcn_layer(a_bf16, h, layer_w[li], layer_b[li], k_lo, k_hi, band,
                       tm, tk, C, n_pad, out_dtype)

    # Graph-membership masks (padded graphs/nodes are all-zero rows/cols).
    one_hot = jax.nn.one_hot(batch_np, g_pad, dtype=jnp.float32)          # (N, g_pad)
    mask_t = jnp.zeros((n_pad, g_pad), jnp.float32).at[:N, :].set(one_hot)
    mask = mask_t.T                                                        # (g_pad, n_pad)
    # (g_tiles, n_pad, 8): graph-group dim last so the pool BlockSpec stays
    # lane/sublane legal for any g_pad.
    mask_t3 = mask_t.reshape(n_pad, g_tiles, SUBLANE).transpose(1, 0, 2)

    counts_np = np.maximum(np.bincount(batch_np, minlength=G).astype(np.float32), 1.0)
    counts = jnp.asarray(counts_np)[:, None]                              # (G, 1)

    pooled_max, pooled_sum = _pool(h, mask, mask_t3, g_pad, tm, C, n_pad)

    # Tiny readout Linear(2E, 1) on lane-dense pooled features (wrapper side).
    p_max = pooled_max[:G, :E]
    p_mean = pooled_sum[:G, :E] / counts
    out = p_max @ params["w_out"][:E] + p_mean @ params["w_out"][E:] + params["b_out"]
    return out


def gcn_loop_reference(params, x, edge_index, batch_index, edge_weight=None,
                       improved=True, emulate_bf16=False):
    """Pure-JAX reference.  emulate_bf16=True applies the same bf16 casts on
    MXU operands as the kernels (tight check); False is plain f32 semantics."""
    x = x.astype(jnp.float32)
    N = x.shape[0]
    G = int(np.asarray(batch_index).max()) + 1
    a = build_norm_adj(edge_index, edge_weight, N, improved)
    a_b = a.astype(jnp.bfloat16)

    def layer(h, w, b):
        if emulate_bf16:
            hw = jnp.dot(h.astype(jnp.bfloat16), w.astype(jnp.bfloat16),
                         preferred_element_type=jnp.float32).astype(jnp.bfloat16)
            agg = jnp.dot(a_b, hw, preferred_element_type=jnp.float32)
        else:
            agg = a @ (h @ w)
        return jnp.tanh(agg + b)

    h = layer(x, params["w0"], params["b0"])
    for i in range(params["wl"].shape[0]):
        h = layer(h, params["wl"][i], params["bl"][i])

    mask = (jnp.asarray(batch_index)[None, :] == jnp.arange(G)[:, None]).astype(jnp.float32)
    counts = jnp.maximum(mask.sum(axis=1, keepdims=True), 1.0)
    if emulate_bf16:
        mean_p = jnp.dot(mask.astype(jnp.bfloat16), h.astype(jnp.bfloat16),
                         preferred_element_type=jnp.float32) / counts
    else:
        mean_p = (mask @ h) / counts
    max_p = jnp.where(mask[:, :, None] > 0, h[None, :, :], NEG_BIG).max(axis=1)
    hid = jnp.concatenate([max_p, mean_p], axis=1)
    return hid @ params["w_out"] + params["b_out"]


def _make_ring_batch(num_graphs, nodes_per_graph, num_features, key):
    src, dst = [], []
    for g in range(num_graphs):
        off = g * nodes_per_graph
        for i in range(nodes_per_graph):
            j = (i + 1) % nodes_per_graph
            src += [off + i, off + j]
            dst += [off + j, off + i]
    edge_index = jnp.array([src, dst], dtype=jnp.int32)
    batch_index = jnp.repeat(jnp.arange(num_graphs, dtype=jnp.int32), nodes_per_graph)
    N = num_graphs * nodes_per_graph
    x = jax.random.normal(key, (N, num_features), jnp.float32)
    return x, edge_index, batch_index


if __name__ == "__main__":
    num_features = 4
    embedding_size = 32
    gnn_layers = 3
    improved = True

    params = init_params(num_features, embedding_size, gnn_layers, seed=23)
    key = jax.random.PRNGKey(0)

    configs = [(2, 8),      # tiny: single A tile, single graph group
               (12, 40),    # >8 graphs: exercises the pool graph-group grid
               (6, 300)]    # graphs span tile boundaries: multi-tile + band skip
    for num_graphs, nodes_per_graph in configs:
        key, sub = jax.random.split(key)
        x, edge_index, batch_index = _make_ring_batch(
            num_graphs, nodes_per_graph, num_features, sub)

        out = gcn_loop_forward(params, x, edge_index, batch_index, None,
                               improved, num_graphs=num_graphs)
        out = jax.block_until_ready(out)
        assert out.shape == (num_graphs, 1)

        ref_bf16 = gcn_loop_reference(params, x, edge_index, batch_index, None,
                                      improved, emulate_bf16=True)
        ref_f32 = gcn_loop_reference(params, x, edge_index, batch_index, None,
                                     improved, emulate_bf16=False)
        # Tight structural check vs the bf16-emulating reference.
        assert jnp.allclose(out, ref_bf16, rtol=2e-3, atol=2e-3), (out, ref_bf16)
        # Loose sanity check vs the full-f32 PyTorch-equivalent semantics.
        assert jnp.allclose(out, ref_f32, rtol=1e-1, atol=1e-1), (out, ref_f32)

    print("KERNEL_OK")
</pallas_src>

<mosaic_0001>
module attributes {stable_mosaic.version = 11 : i64} {
  func.func @_layer_kernel(%arg0: i32, %arg1: i32, %arg2: memref<1xi32, #tpu.memory_space<smem>>, %arg3: memref<1xi32, #tpu.memory_space<smem>>, %arg4: memref<512x512xbf16, #tpu.memory_space<vmem>>, %arg5: memref<512x128xbf16, #tpu.memory_space<vmem>>, %arg6: memref<128x128xbf16, #tpu.memory_space<vmem>>, %arg7: memref<1x128xf32, #tpu.memory_space<vmem>>, %arg8: memref<512x128xbf16, #tpu.memory_space<vmem>>, %arg9: memref<512x128xf32, #tpu.memory_space<vmem>>) attributes {dimension_semantics = [#tpu.dimension_semantics<parallel>, #tpu.dimension_semantics<arbitrary>], iteration_bounds = array<i64: 1, 1>, scalar_prefetch = 2 : i64, scratch_operands = 1 : i64, tpu.core_type = #tpu.core_type<tc>, window_params = [{transform_indices = @transform_0, window_bounds = array<i64: 512, 512>}, {transform_indices = @transform_1, window_bounds = array<i64: 512, 128>}, {pipeline_mode = #tpu.pipeline_mode<synchronous>, transform_indices = @transform_2, window_bounds = array<i64: 128, 128>}, {pipeline_mode = #tpu.pipeline_mode<synchronous>, transform_indices = @transform_3, window_bounds = array<i64: 1, 128>}, {transform_indices = @transform_4, window_bounds = array<i64: 512, 128>}]} {
    %c0_i32 = arith.constant 0 : i32
    %0 = arith.cmpi eq, %arg1, %c0_i32 : i32
    %1 = arith.extui %0 : i1 to i32
    %c0_i32_0 = arith.constant 0 : i32
    %2 = arith.cmpi ne, %1, %c0_i32_0 : i32
    scf.if %2 {
      %cst = arith.constant 0.000000e+00 : f32
      %14 = vector.broadcast %cst : f32 to vector<512x128xf32>
      %c0 = arith.constant 0 : index
      %c0_4 = arith.constant 0 : index
      %15 = vector.load %arg9[%c0, %c0_4] : memref<512x128xf32, #tpu.memory_space<vmem>>, vector<512x128xf32>
      tpu.vector_store %arg9[%c0, %c0_4], %14 {strides = array<i32>} : memref<512x128xf32, #tpu.memory_space<vmem>>, vector<512x128xf32>,
    } else {
    }
    %3 = arith.index_cast %arg0 : i32 to index
    %4 = memref.load %arg2[%3] : memref<1xi32, #tpu.memory_space<smem>>
    %5 = arith.addi %4, %arg1 : i32
    %6 = arith.index_cast %arg0 : i32 to index
    %7 = memref.load %arg3[%6] : memref<1xi32, #tpu.memory_space<smem>>
    %8 = arith.cmpi sle, %5, %7 : i32
    %9 = arith.extui %8 : i1 to i32
    %c0_i32_1 = arith.constant 0 : i32
    %10 = arith.cmpi ne, %9, %c0_i32_1 : i32
    scf.if %10 {
      %c0 = arith.constant 0 : index
      %c0_4 = arith.constant 0 : index
      %14 = vector.load %arg5[%c0, %c0_4] : memref<512x128xbf16, #tpu.memory_space<vmem>>, vector<512x128xbf16>
      %c0_5 = arith.constant 0 : index
      %c0_6 = arith.constant 0 : index
      %15 = vector.load %arg6[%c0_5, %c0_6] : memref<128x128xbf16, #tpu.memory_space<vmem>>, vector<128x128xbf16>
      %cst = arith.constant dense<0.000000e+00> : vector<512x128xf32>
      %16 = tpu.matmul %14, %15, %cst {dimension_numbers = #tpu.dot_dimension_numbers<[1], [0], [0], [1], [0, 0, 1, 1], [], []>} : vector<512x128xbf16>, vector<128x128xbf16>, vector<512x128xf32> -> vector<512x128xf32>
      %17 = arith.truncf %16 : vector<512x128xf32> to vector<512x128xbf16>
      %c0_7 = arith.constant 0 : index
      %c0_8 = arith.constant 0 : index
      %18 = vector.load %arg9[%c0_7, %c0_8] : memref<512x128xf32, #tpu.memory_space<vmem>>, vector<512x128xf32>
      %c0_9 = arith.constant 0 : index
      %c0_10 = arith.constant 0 : index
      %19 = vector.load %arg4[%c0_9, %c0_10] : memref<512x512xbf16, #tpu.memory_space<vmem>>, vector<512x512xbf16>
      %cst_11 = arith.constant dense<0.000000e+00> : vector<512x128xf32>
      %20 = tpu.matmul %19, %17, %cst_11 {dimension_numbers = #tpu.dot_dimension_numbers<[1], [0], [0], [1], [0, 0, 1, 1], [], []>} : vector<512x512xbf16>, vector<512x128xbf16>, vector<512x128xf32> -> vector<512x128xf32>
      %21 = arith.addf %18, %20 : vector<512x128xf32>
      %c0_12 = arith.constant 0 : index
      %c0_13 = arith.constant 0 : index
      %22 = vector.load %arg9[%c0_12, %c0_13] : memref<512x128xf32, #tpu.memory_space<vmem>>, vector<512x128xf32>
      tpu.vector_store %arg9[%c0_12, %c0_13], %21 {strides = array<i32>} : memref<512x128xf32, #tpu.memory_space<vmem>>, vector<512x128xf32>,
    } else {
    }
    %c0_i32_2 = arith.constant 0 : i32
    %11 = arith.cmpi eq, %arg1, %c0_i32_2 : i32
    %12 = arith.extui %11 : i1 to i32
    %c0_i32_3 = arith.constant 0 : i32
    %13 = arith.cmpi ne, %12, %c0_i32_3 : i32
    scf.if %13 {
      %c0 = arith.constant 0 : index
      %c0_4 = arith.constant 0 : index
      %14 = vector.load %arg9[%c0, %c0_4] : memref<512x128xf32, #tpu.memory_space<vmem>>, vector<512x128xf32>
      %c0_5 = arith.constant 0 : index
      %c0_6 = arith.constant 0 : index
      %15 = vector.load %arg7[%c0_5, %c0_6] : memref<1x128xf32, #tpu.memory_space<vmem>>, vector<1x128xf32>
      %16 = vector.broadcast %15 : vector<1x128xf32> to vector<512x128xf32>
      %17 = arith.addf %14, %16 : vector<512x128xf32>
      %18 = math.tanh %17 : vector<512x128xf32>
      %19 = arith.truncf %18 : vector<512x128xf32> to vector<512x128xbf16>
      %c0_7 = arith.constant 0 : index
      %c0_8 = arith.constant 0 : index
      %20 = vector.load %arg8[%c0_7, %c0_8] : memref<512x128xbf16, #tpu.memory_space<vmem>>, vector<512x128xbf16>
      tpu.vector_store %arg8[%c0_7, %c0_8], %19 {strides = array<i32>} : memref<512x128xbf16, #tpu.memory_space<vmem>>, vector<512x128xbf16>,
    } else {
    }
    return
  }
  func.func @transform_0(%arg0: i32, %arg1: i32, %arg2: memref<1xi32, #tpu.memory_space<smem>>, %arg3: memref<1xi32, #tpu.memory_space<smem>>) -> (i32, i32) {
    %0 = arith.index_cast %arg0 : i32 to index
    %1 = memref.load %arg2[%0] : memref<1xi32, #tpu.memory_space<smem>>
    %2 = arith.addi %1, %arg1 : i32
    %3 = arith.index_cast %arg0 : i32 to index
    %4 = memref.load %arg3[%3] : memref<1xi32, #tpu.memory_space<smem>>
    %5 = arith.minsi %2, %4 : i32
    %c0_i32 = arith.constant 0 : i32
    return %arg0, %5 : i32, i32
  }
  func.func @transform_1(%arg0: i32, %arg1: i32, %arg2: memref<1xi32, #tpu.memory_space<smem>>, %arg3: memref<1xi32, #tpu.memory_space<smem>>) -> (i32, i32) {
    %0 = arith.index_cast %arg0 : i32 to index
    %1 = memref.load %arg2[%0] : memref<1xi32, #tpu.memory_space<smem>>
    %2 = arith.addi %1, %arg1 : i32
    %3 = arith.index_cast %arg0 : i32 to index
    %4 = memref.load %arg3[%3] : memref<1xi32, #tpu.memory_space<smem>>
    %5 = arith.minsi %2, %4 : i32
    %c0_i32 = arith.constant 0 : i32
    %c0_i32_0 = arith.constant 0 : i32
    return %5, %c0_i32 : i32, i32
  }
  func.func @transform_2(%arg0: i32, %arg1: i32, %arg2: memref<1xi32, #tpu.memory_space<smem>>, %arg3: memref<1xi32, #tpu.memory_space<smem>>) -> (i32, i32) {
    %c0_i32 = arith.constant 0 : i32
    %c0_i32_0 = arith.constant 0 : i32
    %c0_i32_1 = arith.constant 0 : i32
    return %c0_i32, %c0_i32_0 : i32, i32
  }
  func.func @transform_3(%arg0: i32, %arg1: i32, %arg2: memref<1xi32, #tpu.memory_space<smem>>, %arg3: memref<1xi32, #tpu.memory_space<smem>>) -> (i32, i32) {
    %c0_i32 = arith.constant 0 : i32
    %c0_i32_0 = arith.constant 0 : i32
    %c0_i32_1 = arith.constant 0 : i32
    return %c0_i32, %c0_i32_0 : i32, i32
  }
  func.func @transform_4(%arg0: i32, %arg1: i32, %arg2: memref<1xi32, #tpu.memory_space<smem>>, %arg3: memref<1xi32, #tpu.memory_space<smem>>) -> (i32, i32) {
    %c0_i32 = arith.constant 0 : i32
    %c0_i32_0 = arith.constant 0 : i32
    return %arg0, %c0_i32 : i32, i32
  }
}

</mosaic_0001>

<bundles_post_ra>
// kernel: tpu_custom_call.1
= control target key start
LH: loop header
LB: loop body
LE: loop exit
PB: predicated region body
PF: predicated region fallthrough
CT: control target
= control target key end

     0   :  { %13 = vsyncpa [#allocation7], 0  ;;  %s4275_s0 = inlined_call_operand.<no memory space> [shape: s32[1], index: 0, kind: input, shape index: {}]   ;;  %s4276_s1 = inlined_call_operand.<no memory space> [shape: s32[1], index: 1, kind: input, shape index: {}]   ;;  %s4277_s2 = inlined_call_operand.hbm [shape: bf16[512,512], index: 2, kind: input, shape index: {}]   ;;  %s4278_s3 = inlined_call_operand.hbm [shape: bf16[512,128], index: 3, kind: input, shape index: {}]   ;;  %s4279_s4 = inlined_call_operand.hbm [shape: bf16[128,128], index: 4, kind: input, shape index: {}]   ;;  %s4280_s5 = inlined_call_operand.vmem [shape: f32[1,128], index: 5, kind: input, shape index: {}]   ;;  %s4281_s6 = inlined_call_operand.hbm [shape: bf16[512,128], index: 6, kind: output, shape index: {}]  }
   0x1   :  { %14 = vsyncpa [#allocation10], 0  ;;  %p21_p0 = scmp.lt.s32.totalorder %s4275_s0, %s4276_s1 }
   0x2   :  { %15 = vsyncpa [#allocation8], 0  ;;  %s3989_s25 = smov [#allocation9]   ;;  %s3893_s19 = scalar_lea.hbm %s4278_s3, 4096 }
   0x3   :  { %s49_s26 = sshll.u32 %s3989_s25, 4  ;;  %s50_s26 = int_to_ptr.vmem [resolvable:$true] %s49_s26 }
   0x4   :  { %s22_s7 = scalar_select %p21_p0, %s4275_s0, %s4276_s1 }
   0x6   :  { %s3129_s8 = sshll.u32 %s22_s7, 12  ;;  %s3128_s9 = sshll.u32 %s22_s7, 8 }
   0x7   :  { %s48_s12 = scalar_lea.hbm %s4278_s3, %s3129_s8  ;;  %s4052_s15 = scalar_lea.hbm %s4277_s2, %s3128_s9 }
   0x8   :  { %s3891_s16 = scalar_lea.hbm %s48_s12, 4096  ;;  %p3894_p2 = scmp.lt.u32.totalorder %s48_s12, %s4278_s3 }
   0x9   :  { %p3892_p1 = scmp.ne.s32.totalorder %s48_s12, %s3891_s16  ;;  %p3895_p3 = scmp.lt.u32.totalorder %s3893_s19, %s3891_s16 }
   0xa   :  { %p3897_p5 = scmp.lt.u32.totalorder %s3891_s16, %s48_s12 }
   0xb   :  { %p3896_p4 = por %p3895_p3, %p3894_p2 }
   0xd   :  { %p3898_p6 = por %p3897_p5, %p3896_p4 }
   0xf   :  { %p3899_p7 = pnand %p3898_p6, %p3892_p1 }
  0x11   :  { %3902 = shalt.err (!%p3899_p7)
}
  0x12   :  { %s3903_s22 = scalar_lea.vmem %s50_s26, 4096  ;;  %p3908_p9 = scmp.lt.s32.totalorder %s50_s26, %s50_s26 }
  0x13   :  { %p3904_p8 = scmp.ne.s32.totalorder %s50_s26, %s3903_s22  ;;  %p3909_p10 = scmp.lt.s32.totalorder %s3903_s22, %s3903_s22 }
  0x15   :  { %p3910_p11 = por %p3909_p10, %p3908_p9 }
  0x17   :  { %p3911_p12 = pnand %p3910_p11, %p3904_p8 }
  0x19   :  { %3914 = shalt.err (!%p3911_p12)
}
  0x1a   :  { %s3990_s23 = smov 64   ;;  %s3991_s24 = smov 4  }
  0x1b   :  { %55 = dma.hbm_to_vmem [thread:$0]  %s48_s12, 4096, %s50_s26, [#allocation10], %s3990_s23, %s3990_s23, %s3991_s24  }
  0x1c   :  { %s3992_s3 = smov [#allocation6]   ;;  %s3915_s27 = scalar_lea.hbm %s4052_s15, 16384 }
  0x1d   :  { %s29_s25 = sshll.u32 %s3992_s3, 4  ;;  %p3916_p13 = scmp.ne.s32.totalorder %s4052_s15, %s3915_s27  ;;  %s30_s25 = int_to_ptr.vmem [resolvable:$true] %s29_s25 }
  0x1e   :  { %s3917_s30 = scalar_lea.hbm %s4277_s2, 16384  ;;  %p3918_p0 = scmp.lt.u32.totalorder %s4052_s15, %s4277_s2 }
  0x1f   :  { %p3919_p1 = scmp.lt.u32.totalorder %s3917_s30, %s3915_s27  ;;  %p3921_p3 = scmp.lt.u32.totalorder %s3915_s27, %s4052_s15 }
  0x21   :  { %p3920_p2 = por %p3919_p1, %p3918_p0 }
  0x23   :  { %p3922_p4 = por %p3921_p3, %p3920_p2 }
  0x25   :  { %p3923_p5 = pnand %p3922_p4, %p3916_p13 }
  0x27   :  { %3926 = shalt.err (!%p3923_p5)
}
  0x28   :  { %s3927_s26 = scalar_lea.vmem %s30_s25, 16384  ;;  %p3932_p7 = scmp.lt.s32.totalorder %s30_s25, %s30_s25 }
  0x29   :  { %p3928_p6 = scmp.ne.s32.totalorder %s30_s25, %s3927_s26  ;;  %p3933_p8 = scmp.lt.s32.totalorder %s3927_s26, %s3927_s26 }
  0x2b   :  { %p3934_p9 = por %p3933_p8, %p3932_p7 }
  0x2d   :  { %p3935_p10 = pnand %p3934_p9, %p3928_p6 }
  0x2f   :  { %3938 = shalt.err (!%p3935_p10)
}
  0x30   :  { %s3993_s9 = smov 256   ;;  %s3994_s10 = smov 16  }
  0x31   :  { %35 = dma.hbm_to_vmem [thread:$0]  %s4052_s15, 16384, %s30_s25, [#allocation7], %s3993_s9, %s3993_s9, %s3994_s10  }
  0x32   :  { %s3995_s11 = smov [#allocation11]   ;;  %s3939_s14 = scalar_lea.hbm %s4279_s4, 1024 }
  0x33   :  { %s61_s12 = sshll.u32 %s3995_s11, 4  ;;  %p3940_p11 = scmp.ne.s32.totalorder %s4279_s4, %s3939_s14  ;;  %s62_s12 = int_to_ptr.vmem [resolvable:$true] %s61_s12 }
  0x34   :  { %p3943_p12 = scmp.lt.u32.totalorder %s3939_s14, %s4279_s4 }
  0x36   :  { %p3945_p13 = pnand %p3943_p12, %p3940_p11 }
  0x38   :  { %3948 = shalt.err (!%p3945_p13)
}
  0x39   :  { %s3949_s20 = scalar_lea.vmem %s62_s12, 1024  ;;  %p3954_p1 = scmp.lt.s32.totalorder %s62_s12, %s62_s12 }
  0x3a   :  { %p3950_p0 = scmp.ne.s32.totalorder %s62_s12, %s3949_s20  ;;  %p3955_p2 = scmp.lt.s32.totalorder %s3949_s20, %s3949_s20 }
  0x3c   :  { %p3956_p3 = por %p3955_p2, %p3954_p1 }
  0x3e   :  { %p3957_p4 = pnand %p3956_p3, %p3950_p0 }
  0x40   :  { %3960 = shalt.err (!%p3957_p4)
}
  0x41   :  { %67 = dma.hbm_to_vmem [thread:$0]  %s4279_s4, 1024, %s62_s12, [#allocation10], %s3990_s23, %s3990_s23, %s3991_s24  }
  0x42   :  { %3983 = dma.done.wait [#allocation7], 16384  }
  0x43   :  { %3984 = vsyncadd [#allocation7], 4294950912 }
  0x44   :  { %3985 = dma.done.wait [#allocation10], 5120  }
  0x45   :  { %3986 = vsyncadd [#allocation10], 4294962176  ;;  %v3996_v0 = vmov 0.0   ;;  %p2894_p5 = scmp.gt.s32.totalorder %s4275_s0, %s4276_s1 }
  0x46   :  { %96 = vst [vmem:[#allocation2] sm:$0xff] %v3996_v0  ;;  %97 = vst [vmem:[#allocation2 + $0x8] sm:$0xff] %v3996_v0  ;;  %v3531_v1 = vld [vmem:[#allocation11] sm:$0xff] (!%p2894_p5)   ;;  %v3532_v2 = vld [vmem:[#allocation11 + $0x8] sm:$0xff] (!%p2894_p5)   ;;  %v3997_v41 = vmov (!%p2894_p5), 0  }
  0x47   :  { %98 = vst [vmem:[#allocation2 + $0x10] sm:$0xff] %v3996_v0  ;;  %99 = vst [vmem:[#allocation2 + $0x18] sm:$0xff] %v3996_v0  ;;  %3425 = vmatprep.subr.bf16.mxu0 (!%p2894_p5), %v3531_v1  ;;  %3505 = vmatprep.subr.bf16.mxu1 (!%p2894_p5), %v3531_v1  ;;  %v3533_v3 = vld [vmem:[#allocation11 + $0x10] sm:$0xff] (!%p2894_p5)   ;;  %v3534_v4 = vld [vmem:[#allocation11 + $0x18] sm:$0xff] (!%p2894_p5)  }
  0x48   :  { %100 = vst [vmem:[#allocation2 + $0x20] sm:$0xff] %v3996_v0  ;;  %101 = vst [vmem:[#allocation2 + $0x28] sm:$0xff] %v3996_v0  ;;  %3426 = vmatpush3.bf16.msra.mxu0 (!%p2894_p5), %v3531_v1  ;;  %3513 = vmatpush3.bf16.msra.mxu1 (!%p2894_p5), %v3531_v1  ;;  %v3539_v5 = vld [vmem:[#allocation9] sm:$0xff] (!%p2894_p5)   ;;  %v3536_v8 = vld [vmem:[#allocation11 + $0x28] sm:$0xff] (!%p2894_p5)  }
  0x49   :  { %102 = vst [vmem:[#allocation2 + $0x30] sm:$0xff] %v3996_v0  ;;  %103 = vst [vmem:[#allocation2 + $0x38] sm:$0xff] %v3996_v0  ;;  %3427 = vmatprep.subr.bf16.mxu0 (!%p2894_p5), %v3532_v2  ;;  %3506 = vmatprep.subr.bf16.mxu1 (!%p2894_p5), %v3532_v2  ;;  %v3540_v6 = vld [vmem:[#allocation9 + $0x80] sm:$0xff] (!%p2894_p5)   ;;  %v3537_v9 = vld [vmem:[#allocation11 + $0x30] sm:$0xff] (!%p2894_p5)  }
  0x4a   :  { %104 = vst [vmem:[#allocation2 + $0x40] sm:$0xff] %v3996_v0  ;;  %105 = vst [vmem:[#allocation2 + $0x48] sm:$0xff] %v3996_v0  ;;  %3441 = vmatprep.mubr.bf16.mxu0 (!%p2894_p5), %v3539_v5  ;;  %v3535_v7 = vld [vmem:[#allocation11 + $0x20] sm:$0xff] (!%p2894_p5)   ;;  %3473 = vmatprep.mubr.bf16.mxu1 (!%p2894_p5), %v3540_v6  ;;  %v3538_v10 = vld [vmem:[#allocation11 + $0x38] sm:$0xff] (!%p2894_p5)  }
  0x4b   :  { %106 = vst [vmem:[#allocation2 + $0x50] sm:$0xff] %v3996_v0  ;;  %107 = vst [vmem:[#allocation2 + $0x58] sm:$0xff] %v3996_v0  ;;  %v3541_v11 = vld [vmem:[#allocation9 + $0x8] sm:$0xff] (!%p2894_p5)   ;;  %v3543_v13 = vld [vmem:[#allocation9 + $0x10] sm:$0xff] (!%p2894_p5)  }
  0x4c   :  { %108 = vst [vmem:[#allocation2 + $0x60] sm:$0xff] %v3996_v0  ;;  %109 = vst [vmem:[#allocation2 + $0x68] sm:$0xff] %v3996_v0  ;;  %3428 = vmatpush3.bf16.msra.mxu0 (!%p2894_p5), %v3532_v2  ;;  %3514 = vmatpush3.bf16.msra.mxu1 (!%p2894_p5), %v3532_v2  ;;  %v3542_v12 = vld [vmem:[#allocation9 + $0x88] sm:$0xff] (!%p2894_p5)   ;;  %v3544_v14 = vld [vmem:[#allocation9 + $0x90] sm:$0xff] (!%p2894_p5)  }
  0x4d   :  { %110 = vst [vmem:[#allocation2 + $0x70] sm:$0xff] %v3996_v0  ;;  %111 = vst [vmem:[#allocation2 + $0x78] sm:$0xff] %v3996_v0  ;;  %3429 = vmatprep.subr.bf16.mxu0 (!%p2894_p5), %v3533_v3  ;;  %3507 = vmatprep.subr.bf16.mxu1 (!%p2894_p5), %v3533_v3  ;;  %v3545_v15 = vld [vmem:[#allocation9 + $0x18] sm:$0xff] (!%p2894_p5)   ;;  %v3547_v17 = vld [vmem:[#allocation9 + $0x20] sm:$0xff] (!%p2894_p5)  }
  0x4e   :  { %112 = vst [vmem:[#allocation2 + $0x80] sm:$0xff] %v3996_v0  ;;  %113 = vst [vmem:[#allocation2 + $0x88] sm:$0xff] %v3996_v0  ;;  %v3546_v16 = vld [vmem:[#allocation9 + $0x98] sm:$0xff] (!%p2894_p5)   ;;  %v3548_v18 = vld [vmem:[#allocation9 + $0xa0] sm:$0xff] (!%p2894_p5)  }
  0x4f   :  { %114 = vst [vmem:[#allocation2 + $0x90] sm:$0xff] %v3996_v0  ;;  %115 = vst [vmem:[#allocation2 + $0x98] sm:$0xff] %v3996_v0  ;;  %v3549_v19 = vld [vmem:[#allocation9 + $0x28] sm:$0xff] (!%p2894_p5)   ;;  %v3551_v21 = vld [vmem:[#allocation9 + $0x30] sm:$0xff] (!%p2894_p5)  }
  0x50   :  { %116 = vst [vmem:[#allocation2 + $0xa0] sm:$0xff] %v3996_v0  ;;  %117 = vst [vmem:[#allocation2 + $0xa8] sm:$0xff] %v3996_v0  ;;  %3430 = vmatpush3.bf16.msra.mxu0 (!%p2894_p5), %v3533_v3  ;;  %3515 = vmatpush3.bf16.msra.mxu1 (!%p2894_p5), %v3533_v3  ;;  %v3550_v20 = vld [vmem:[#allocation9 + $0xa8] sm:$0xff] (!%p2894_p5)   ;;  %v3552_v22 = vld [vmem:[#allocation9 + $0xb0] sm:$0xff] (!%p2894_p5)  }
  0x51   :  { %118 = vst [vmem:[#allocation2 + $0xb0] sm:$0xff] %v3996_v0  ;;  %119 = vst [vmem:[#allocation2 + $0xb8] sm:$0xff] %v3996_v0  ;;  %3431 = vmatprep.subr.bf16.mxu0 (!%p2894_p5), %v3534_v4  ;;  %3508 = vmatprep.subr.bf16.mxu1 (!%p2894_p5), %v3534_v4  ;;  %v3553_v23 = vld [vmem:[#allocation9 + $0x38] sm:$0xff] (!%p2894_p5)   ;;  %v3555_v25 = vld [vmem:[#allocation9 + $0x40] sm:$0xff] (!%p2894_p5)  }
  0x52   :  { %120 = vst [vmem:[#allocation2 + $0xc0] sm:$0xff] %v3996_v0  ;;  %121 = vst [vmem:[#allocation2 + $0xc8] sm:$0xff] %v3996_v0  ;;  %v3554_v24 = vld [vmem:[#allocation9 + $0xb8] sm:$0xff] (!%p2894_p5)   ;;  %v3556_v26 = vld [vmem:[#allocation9 + $0xc0] sm:$0xff] (!%p2894_p5)  }
  0x53   :  { %122 = vst [vmem:[#allocation2 + $0xd0] sm:$0xff] %v3996_v0  ;;  %123 = vst [vmem:[#allocation2 + $0xd8] sm:$0xff] %v3996_v0  ;;  %v3557_v27 = vld [vmem:[#allocation9 + $0x48] sm:$0xff] (!%p2894_p5)   ;;  %v3559_v29 = vld [vmem:[#allocation9 + $0x50] sm:$0xff] (!%p2894_p5)  }
  0x54   :  { %124 = vst [vmem:[#allocation2 + $0xe0] sm:$0xff] %v3996_v0  ;;  %125 = vst [vmem:[#allocation2 + $0xe8] sm:$0xff] %v3996_v0  ;;  %3432 = vmatpush3.bf16.msra.mxu0 (!%p2894_p5), %v3534_v4  ;;  %3516 = vmatpush3.bf16.msra.mxu1 (!%p2894_p5), %v3534_v4  ;;  %v3558_v28 = vld [vmem:[#allocation9 + $0xc8] sm:$0xff] (!%p2894_p5)   ;;  %v3560_v30 = vld [vmem:[#allocation9 + $0xd0] sm:$0xff] (!%p2894_p5)  }
  0x55   :  { %126 = vst [vmem:[#allocation2 + $0xf0] sm:$0xff] %v3996_v0  ;;  %127 = vst [vmem:[#allocation2 + $0xf8] sm:$0xff] %v3996_v0  ;;  %3433 = vmatprep.subr.bf16.mxu0 (!%p2894_p5), %v3535_v7  ;;  %3509 = vmatprep.subr.bf16.mxu1 (!%p2894_p5), %v3535_v7  ;;  %v3561_v31 = vld [vmem:[#allocation9 + $0x58] sm:$0xff] (!%p2894_p5)   ;;  %v3563_v33 = vld [vmem:[#allocation9 + $0x60] sm:$0xff] (!%p2894_p5)  }
  0x56   :  { %128 = vst [vmem:[#allocation2 + $0x100] sm:$0xff] %v3996_v0  ;;  %129 = vst [vmem:[#allocation2 + $0x108] sm:$0xff] %v3996_v0  ;;  %v3562_v32 = vld [vmem:[#allocation9 + $0xd8] sm:$0xff] (!%p2894_p5)   ;;  %v3564_v34 = vld [vmem:[#allocation9 + $0xe0] sm:$0xff] (!%p2894_p5)  }
  0x57   :  { %130 = vst [vmem:[#allocation2 + $0x110] sm:$0xff] %v3996_v0  ;;  %131 = vst [vmem:[#allocation2 + $0x118] sm:$0xff] %v3996_v0  ;;  %v3565_v35 = vld [vmem:[#allocation9 + $0x68] sm:$0xff] (!%p2894_p5)   ;;  %v3567_v37 = vld [vmem:[#allocation9 + $0x70] sm:$0xff] (!%p2894_p5)  }
  0x58   :  { %132 = vst [vmem:[#allocation2 + $0x120] sm:$0xff] %v3996_v0  ;;  %133 = vst [vmem:[#allocation2 + $0x128] sm:$0xff] %v3996_v0  ;;  %3434 = vmatpush3.bf16.msra.mxu0 (!%p2894_p5), %v3535_v7  ;;  %3517 = vmatpush3.bf16.msra.mxu1 (!%p2894_p5), %v3535_v7  ;;  %v3566_v36 = vld [vmem:[#allocation9 + $0xe8] sm:$0xff] (!%p2894_p5)   ;;  %v3568_v38 = vld [vmem:[#allocation9 + $0xf0] sm:$0xff] (!%p2894_p5)  }
  0x59   :  { %134 = vst [vmem:[#allocation2 + $0x130] sm:$0xff] %v3996_v0  ;;  %135 = vst [vmem:[#allocation2 + $0x138] sm:$0xff] %v3996_v0  ;;  %3435 = vmatprep.subr.bf16.mxu0 (!%p2894_p5), %v3536_v8  ;;  %3510 = vmatprep.subr.bf16.mxu1 (!%p2894_p5), %v3536_v8  ;;  %v3569_v39 = vld [vmem:[#allocation9 + $0x78] sm:$0xff] (!%p2894_p5)   ;;  %v3573_v42 = vld [vmem:[#allocation6 + $0x4] ss:$16 sps:$4 sm:$0xff] (!%p2894_p5)  }
  0x5a   :  { %136 = vst [vmem:[#allocation2 + $0x140] sm:$0xff] %v3996_v0  ;;  %137 = vst [vmem:[#allocation2 + $0x148] sm:$0xff] %v3996_v0  ;;  %v3570_v40 = vld [vmem:[#allocation9 + $0xf8] sm:$0xff] (!%p2894_p5)  }
  0x5b   :  { %138 = vst [vmem:[#allocation2 + $0x150] sm:$0xff] %v3996_v0  ;;  %139 = vst [vmem:[#allocation2 + $0x158] sm:$0xff] %v3996_v0  ;;  %v3576_v43 = vld [vmem:[#allocation6 + $0xc] ss:$16 sps:$4 sm:$0xff] (!%p2894_p5)  }
  0x5c   :  { %140 = vst [vmem:[#allocation2 + $0x160] sm:$0xff] %v3996_v0  ;;  %141 = vst [vmem:[#allocation2 + $0x168] sm:$0xff] %v3996_v0  ;;  %3436 = vmatpush3.bf16.msra.mxu0 (!%p2894_p5), %v3536_v8  ;;  %3518 = vmatpush3.bf16.msra.mxu1 (!%p2894_p5), %v3536_v8 }
  0x5d   :  { %142 = vst [vmem:[#allocation2 + $0x170] sm:$0xff] %v3996_v0  ;;  %143 = vst [vmem:[#allocation2 + $0x178] sm:$0xff] %v3996_v0  ;;  %3437 = vmatprep.subr.bf16.mxu0 (!%p2894_p5), %v3537_v9  ;;  %3511 = vmatprep.subr.bf16.mxu1 (!%p2894_p5), %v3537_v9 }
  0x5e   :  { %144 = vst [vmem:[#allocation2 + $0x180] sm:$0xff] %v3996_v0  ;;  %145 = vst [vmem:[#allocation2 + $0x188] sm:$0xff] %v3996_v0 }
  0x5f   :  { %146 = vst [vmem:[#allocation2 + $0x190] sm:$0xff] %v3996_v0  ;;  %147 = vst [vmem:[#allocation2 + $0x198] sm:$0xff] %v3996_v0  ;;  %166 = sbr.rel (%p2894_p5) target bundleno = 850 (0x352), region = 37 }
  0x60   :  { %148 = vst [vmem:[#allocation2 + $0x1a0] sm:$0xff] %v3996_v0  ;;  %149 = vst [vmem:[#allocation2 + $0x1a8] sm:$0xff] %v3996_v0  ;;  %3438 = vmatpush3.bf16.msra.mxu0 (!%p2894_p5), %v3537_v9  ;;  %3519 = vmatpush3.bf16.msra.mxu1 (!%p2894_p5), %v3537_v9 }
  0x61   :  { %150 = vst [vmem:[#allocation2 + $0x1b0] sm:$0xff] %v3996_v0  ;;  %151 = vst [vmem:[#allocation2 + $0x1b8] sm:$0xff] %v3996_v0  ;;  %3439 = vmatprep.subr.bf16.mxu0 (!%p2894_p5), %v3538_v10  ;;  %3512 = vmatprep.subr.bf16.mxu1 (!%p2894_p5), %v3538_v10 }
  0x62   :  { %152 = vst [vmem:[#allocation2 + $0x1c0] sm:$0xff] %v3996_v0  ;;  %153 = vst [vmem:[#allocation2 + $0x1c8] sm:$0xff] %v3996_v0 }
  0x63   :  { %154 = vst [vmem:[#allocation2 + $0x1d0] sm:$0xff] %v3996_v0  ;;  %155 = vst [vmem:[#allocation2 + $0x1d8] sm:$0xff] %v3996_v0 }
  0x64   :  { %156 = vst [vmem:[#allocation2 + $0x1e0] sm:$0xff] %v3996_v0  ;;  %157 = vst [vmem:[#allocation2 + $0x1e8] sm:$0xff] %v3996_v0  ;;  %3440 = vmatpush3.bf16.msra.mxu0 (!%p2894_p5), %v3538_v10  ;;  %3520 = vmatpush3.bf16.msra.mxu1 (!%p2894_p5), %v3538_v10 }
  0x65   :  { %158 = vst [vmem:[#allocation2 + $0x1f0] sm:$0xff] %v3996_v0  ;;  %159 = vst [vmem:[#allocation2 + $0x1f8] sm:$0xff] %v3996_v0  ;;  %1640 = vmatprep.subr.bf16.mxu1 (!%p2894_p5), %v3997_v41  ;;  %1929 = vmatprep.subr.bf16.mxu0 (!%p2894_p5), %v3997_v41 }
  0x67   :  { %3442 = vmatmul.mubr.bf16.vlgmr.msra.gmra.mrb[0].mxu0 %v3541_v11  ;;  %3474 = vmatmul.mubr.bf16.vlgmr.msra.gmra.mrb[0].mxu1 %v3542_v12 }
  0x68   :  { %3445 = vmatprep.mubr.bf16.mxu0 %v3543_v13  ;;  %3477 = vmatprep.mubr.bf16.mxu1 %v3544_v14 }
  0x6f   :  { %3446 = vmatmul.mubr.bf16.gmra.mrb[4].mxu0 %v3545_v15  ;;  %3478 = vmatmul.mubr.bf16.gmra.mrb[4].mxu1 %v3546_v16 }
  0x70   :  { %3449 = vmatprep.mubr.bf16.mxu0 %v3547_v17  ;;  %3481 = vmatprep.mubr.bf16.mxu1 %v3548_v18 }
  0x77   :  { %3450 = vmatmul.mubr.bf16.gmra.mrb[8].mxu0 %v3549_v19  ;;  %3482 = vmatmul.mubr.bf16.gmra.mrb[8].mxu1 %v3550_v20 }
  0x78   :  { %3453 = vmatprep.mubr.bf16.mxu0 %v3551_v21  ;;  %3485 = vmatprep.mubr.bf16.mxu1 %v3552_v22 }
  0x7f   :  { %3454 = vmatmul.mubr.bf16.gmra.mrb[12].mxu0 %v3553_v23  ;;  %3486 = vmatmul.mubr.bf16.gmra.mrb[12].mxu1 %v3554_v24 }
  0x80   :  { %3457 = vmatprep.mubr.bf16.mxu0 %v3555_v25  ;;  %3489 = vmatprep.mubr.bf16.mxu1 %v3556_v26 }
  0x87   :  { %3458 = vmatmul.mubr.bf16.gmra.mrb[16].mxu0 %v3557_v27  ;;  %3490 = vmatmul.mubr.bf16.gmra.mrb[16].mxu1 %v3558_v28 }
  0x88   :  { %3461 = vmatprep.mubr.bf16.mxu0 %v3559_v29  ;;  %3493 = vmatprep.mubr.bf16.mxu1 %v3560_v30 }
  0x8f   :  { %3462 = vmatmul.mubr.bf16.gmra.mrb[20].mxu0 %v3561_v31  ;;  %3494 = vmatmul.mubr.bf16.gmra.mrb[20].mxu1 %v3562_v32 }
  0x90   :  { %3465 = vmatprep.mubr.bf16.mxu0 %v3563_v33  ;;  %3497 = vmatprep.mubr.bf16.mxu1 %v3564_v34 }
  0x97   :  { %3466 = vmatmul.mubr.bf16.gmra.mrb[24].mxu0 %v3565_v35  ;;  %3498 = vmatmul.mubr.bf16.gmra.mrb[24].mxu1 %v3566_v36 }
  0x98   :  { %3469 = vmatprep.mubr.bf16.mxu0 %v3567_v37  ;;  %3501 = vmatprep.mubr.bf16.mxu1 %v3568_v38 }
  0x9f   :  { %3470 = vmatmul.mubr.bf16.gmra.mrb[28].mxu0 %v3569_v39  ;;  %3502 = vmatmul.mubr.bf16.gmra.mrb[28].mxu1 %v3570_v40 }
  0xa0   :  { %1672 = vmatprep.mubr.bf16.mxu1 %v3573_v42  ;;  %1961 = vmatprep.mubr.bf16.mxu0 %v3576_v43 }
 0x13a   :  { %v3443_v44 = vpop.f32.mrb[0].mxu0  ;;  %v3475_v45 = vpop.f32.mrb[0].mxu1 }
 0x13b   :  { %v521_v46 = vpop.f32.mrb[1].mxu0  ;;  %v649_v47 = vpop.f32.mrb[1].mxu1 }
 0x13c   :  { %v3444_v48 = vpop.f32.mrb[2].mxu0  ;;  %v3476_v49 = vpop.f32.mrb[2].mxu1 }
 0x13d   :  { %v777_v50 = vpack.c.bf16 %v3444_v48, %v3443_v44  ;;  %v793_v51 = vpack.c.bf16 %v3476_v49, %v3475_v45  ;;  %v524_v52 = vpop.f32.mrb[3].mxu0  ;;  %v652_v53 = vpop.f32.mrb[3].mxu1 }
 0x13e   :  { %v776_v54 = vpack.c.bf16 %v524_v52, %v521_v46  ;;  %v792_v55 = vpack.c.bf16 %v652_v53, %v649_v47 }
 0x140   :  { %1641 = vmatpush1.bf16.msra.mxu1 %v776_v54  ;;  %1930 = vmatpush1.bf16.msra.mxu0 %v792_v55 }
 0x141   :  { %1642 = vmatprep.subr.bf16.mxu1 %v3997_v41  ;;  %1931 = vmatprep.subr.bf16.mxu0 %v3997_v41 }
 0x142   :  { %v3447_v56 = vpop.f32.mrb[4].mxu0  ;;  %v3479_v57 = vpop.f32.mrb[4].mxu1 }
 0x143   :  { %v537_v58 = vpop.f32.mrb[5].mxu0  ;;  %v665_v59 = vpop.f32.mrb[5].mxu1 }
 0x144   :  { %v3448_v60 = vpop.f32.mrb[6].mxu0  ;;  %v3480_v61 = vpop.f32.mrb[6].mxu1  ;;  %1643 = vmatpush1.bf16.msra.mxu1 %v777_v50  ;;  %1932 = vmatpush1.bf16.msra.mxu0 %v793_v51 }
 0x145   :  { %v779_v62 = vpack.c.bf16 %v3448_v60, %v3447_v56  ;;  %v795_v63 = vpack.c.bf16 %v3480_v61, %v3479_v57  ;;  %v540_v0 = vpop.f32.mrb[7].mxu0  ;;  %v668_v1 = vpop.f32.mrb[7].mxu1  ;;  %1644 = vmatprep.subr.bf16.mxu1 %v3997_v41  ;;  %1933 = vmatprep.subr.bf16.mxu0 %v3997_v41 }
 0x146   :  { %v778_v2 = vpack.c.bf16 %v540_v0, %v537_v58  ;;  %v794_v3 = vpack.c.bf16 %v668_v1, %v665_v59 }
 0x148   :  { %1645 = vmatpush1.bf16.msra.mxu1 %v778_v2  ;;  %1934 = vmatpush1.bf16.msra.mxu0 %v794_v3 }
 0x149   :  { %1646 = vmatprep.subr.bf16.mxu1 %v3997_v41  ;;  %1935 = vmatprep.subr.bf16.mxu0 %v3997_v41 }
 0x14a   :  { %v3451_v4 = vpop.f32.mrb[8].mxu0  ;;  %v3483_v5 = vpop.f32.mrb[8].mxu1 }
 0x14b   :  { %v553_v6 = vpop.f32.mrb[9].mxu0  ;;  %v681_v7 = vpop.f32.mrb[9].mxu1 }
 0x14c   :  { %v3452_v8 = vpop.f32.mrb[10].mxu0  ;;  %v3484_v9 = vpop.f32.mrb[10].mxu1  ;;  %1647 = vmatpush1.bf16.msra.mxu1 %v779_v62  ;;  %1936 = vmatpush1.bf16.msra.mxu0 %v795_v63 }
 0x14d   :  { %v781_v10 = vpack.c.bf16 %v3452_v8, %v3451_v4  ;;  %v797_v11 = vpack.c.bf16 %v3484_v9, %v3483_v5  ;;  %v556_v12 = vpop.f32.mrb[11].mxu0  ;;  %v684_v13 = vpop.f32.mrb[11].mxu1  ;;  %1648 = vmatprep.subr.bf16.mxu1 %v3997_v41  ;;  %1937 = vmatprep.subr.bf16.mxu0 %v3997_v41 }
 0x14e   :  { %v780_v14 = vpack.c.bf16 %v556_v12, %v553_v6  ;;  %v796_v15 = vpack.c.bf16 %v684_v13, %v681_v7  ;;  %v3571_v13 = vld [vmem:[#allocation6] ss:$16 sps:$4 sm:$0xff]  }
 0x150   :  { %1649 = vmatpush1.bf16.msra.mxu1 %v780_v14  ;;  %1938 = vmatpush1.bf16.msra.mxu0 %v796_v15  ;;  %v3574_v14 = vld [vmem:[#allocation6 + $0x8] ss:$16 sps:$4 sm:$0xff]   ;;  %v3577_v15 = vld [vmem:[#allocation6 + $0x24] ss:$16 sps:$4 sm:$0xff]  }
 0x151   :  { %1650 = vmatprep.subr.bf16.mxu1 %v3997_v41  ;;  %1939 = vmatprep.subr.bf16.mxu0 %v3997_v41 }
 0x152   :  { %v3455_v16 = vpop.f32.mrb[12].mxu0  ;;  %v3487_v17 = vpop.f32.mrb[12].mxu1 }
 0x153   :  { %v569_v18 = vpop.f32.mrb[13].mxu0  ;;  %v697_v19 = vpop.f32.mrb[13].mxu1 }
 0x154   :  { %v3456_v20 = vpop.f32.mrb[14].mxu0  ;;  %v3488_v21 = vpop.f32.mrb[14].mxu1  ;;  %1651 = vmatpush1.bf16.msra.mxu1 %v781_v10  ;;  %1940 = vmatpush1.bf16.msra.mxu0 %v797_v11 }
 0x155   :  { %v783_v22 = vpack.c.bf16 %v3456_v20, %v3455_v16  ;;  %v799_v23 = vpack.c.bf16 %v3488_v21, %v3487_v17  ;;  %v572_v24 = vpop.f32.mrb[15].mxu0  ;;  %v700_v25 = vpop.f32.mrb[15].mxu1  ;;  %1652 = vmatprep.subr.bf16.mxu1 %v3997_v41  ;;  %1941 = vmatprep.subr.bf16.mxu0 %v3997_v41  ;;  %v3579_v16 = vld [vmem:[#allocation6 + $0x2c] ss:$16 sps:$4 sm:$0xff]   ;;  %v3581_v17 = vld [vmem:[#allocation6 + $0x20] ss:$16 sps:$4 sm:$0xff]  }
 0x156   :  { %v782_v26 = vpack.c.bf16 %v572_v24, %v569_v18  ;;  %v798_v27 = vpack.c.bf16 %v700_v25, %v697_v19  ;;  %v3582_v18 = vld [vmem:[#allocation6 + $0x28] ss:$16 sps:$4 sm:$0xff]   ;;  %v3583_v19 = vld [vmem:[#allocation6 + $0x44] ss:$16 sps:$4 sm:$0xff]   ;;  %v3585_v20 = vld [vmem:[#allocation6 + $0x4c] ss:$16 sps:$4 sm:$0xff]  }
 0x157   :  { %v3587_v21 = vld [vmem:[#allocation6 + $0x40] ss:$16 sps:$4 sm:$0xff]   ;;  %v3594_v25 = vld [vmem:[#allocation6 + $0x68] ss:$16 sps:$4 sm:$0xff]  }
 0x158   :  { %1653 = vmatpush1.bf16.msra.mxu1 %v782_v26  ;;  %1942 = vmatpush1.bf16.msra.mxu0 %v798_v27  ;;  %v3593_v24 = vld [vmem:[#allocation6 + $0x60] ss:$16 sps:$4 sm:$0xff]   ;;  %v3595_v26 = vld [vmem:[#allocation6 + $0x84] ss:$16 sps:$4 sm:$0xff]   ;;  %v3597_v27 = vld [vmem:[#allocation6 + $0x8c] ss:$16 sps:$4 sm:$0xff]  }
 0x159   :  { %1654 = vmatprep.subr.bf16.mxu1 %v3997_v41  ;;  %1943 = vmatprep.subr.bf16.mxu0 %v3997_v41 }
 0x15a   :  { %v3459_v28 = vpop.f32.mrb[16].mxu0  ;;  %v3491_v29 = vpop.f32.mrb[16].mxu1 }
 0x15b   :  { %v585_v30 = vpop.f32.mrb[17].mxu0  ;;  %v713_v31 = vpop.f32.mrb[17].mxu1 }
 0x15c   :  { %v3460_v32 = vpop.f32.mrb[18].mxu0  ;;  %v3492_v33 = vpop.f32.mrb[18].mxu1  ;;  %1655 = vmatpush1.bf16.msra.mxu1 %v783_v22  ;;  %1944 = vmatpush1.bf16.msra.mxu0 %v799_v23  ;;  %v3589_v22 = vld [vmem:[#allocation6 + $0x64] ss:$16 sps:$4 sm:$0xff]   ;;  %v3591_v23 = vld [vmem:[#allocation6 + $0x6c] ss:$16 sps:$4 sm:$0xff]  }
 0x15d   :  { %v785_v34 = vpack.c.bf16 %v3460_v32, %v3459_v28  ;;  %v801_v35 = vpack.c.bf16 %v3492_v33, %v3491_v29  ;;  %v588_v36 = vpop.f32.mrb[19].mxu0  ;;  %v716_v37 = vpop.f32.mrb[19].mxu1  ;;  %1656 = vmatprep.subr.bf16.mxu1 %v3997_v41  ;;  %1945 = vmatprep.subr.bf16.mxu0 %v3997_v41  ;;  %v3599_v28 = vld [vmem:[#allocation6 + $0x80] ss:$16 sps:$4 sm:$0xff]   ;;  %v3600_v29 = vld [vmem:[#allocation6 + $0x88] ss:$16 sps:$4 sm:$0xff]  }
 0x15e   :  { %v784_v38 = vpack.c.bf16 %v588_v36, %v585_v30  ;;  %v800_v39 = vpack.c.bf16 %v716_v37, %v713_v31  ;;  %v3601_v30 = vld [vmem:[#allocation6 + $0xa4] ss:$16 sps:$4 sm:$0xff]   ;;  %v3603_v31 = vld [vmem:[#allocation6 + $0xac] ss:$16 sps:$4 sm:$0xff]   ;;  %v3605_v32 = vld [vmem:[#allocation6 + $0xa0] ss:$16 sps:$4 sm:$0xff]  }
 0x15f   :  { %v3606_v33 = vld [vmem:[#allocation6 + $0xa8] ss:$16 sps:$4 sm:$0xff]   ;;  %v3611_v36 = vld [vmem:[#allocation6 + $0xc0] ss:$16 sps:$4 sm:$0xff]  }
 0x160   :  { %1657 = vmatpush1.bf16.msra.mxu1 %v784_v38  ;;  %1946 = vmatpush1.bf16.msra.mxu0 %v800_v39  ;;  %v3612_v37 = vld [vmem:[#allocation6 + $0xc8] ss:$16 sps:$4 sm:$0xff]   ;;  %v3613_v38 = vld [vmem:[#allocation6 + $0xe4] ss:$16 sps:$4 sm:$0xff]   ;;  %v3615_v39 = vld [vmem:[#allocation6 + $0xec] ss:$16 sps:$4 sm:$0xff]  }
 0x161   :  { %1658 = vmatprep.subr.bf16.mxu1 %v3997_v41  ;;  %1947 = vmatprep.subr.bf16.mxu0 %v3997_v41 }
 0x162   :  { %v3463_v40 = vpop.f32.mrb[20].mxu0  ;;  %v3495_v42 = vpop.f32.mrb[20].mxu1 }
 0x163   :  { %v601_v43 = vpop.f32.mrb[21].mxu0  ;;  %v729_v44 = vpop.f32.mrb[21].mxu1 }
 0x164   :  { %v3464_v45 = vpop.f32.mrb[22].mxu0  ;;  %v3496_v46 = vpop.f32.mrb[22].mxu1  ;;  %1659 = vmatpush1.bf16.msra.mxu1 %v785_v34  ;;  %1948 = vmatpush1.bf16.msra.mxu0 %v801_v35  ;;  %v3607_v34 = vld [vmem:[#allocation6 + $0xc4] ss:$16 sps:$4 sm:$0xff]   ;;  %v3609_v35 = vld [vmem:[#allocation6 + $0xcc] ss:$16 sps:$4 sm:$0xff]  }
 0x165   :  { %v787_v47 = vpack.c.bf16 %v3464_v45, %v3463_v40  ;;  %v803_v48 = vpack.c.bf16 %v3496_v46, %v3495_v42  ;;  %v604_v49 = vpop.f32.mrb[23].mxu0  ;;  %v732_v50 = vpop.f32.mrb[23].mxu1  ;;  %1660 = vmatprep.subr.bf16.mxu1 %v3997_v41  ;;  %1949 = vmatprep.subr.bf16.mxu0 %v3997_v41  ;;  %v3617_v40 = vld [vmem:[#allocation6 + $0xe0] ss:$16 sps:$4 sm:$0xff]   ;;  %v3618_v42 = vld [vmem:[#allocation6 + $0xe8] ss:$16 sps:$4 sm:$0xff]  }
 0x166   :  { %v786_v51 = vpack.c.bf16 %v604_v49, %v601_v43  ;;  %v802_v52 = vpack.c.bf16 %v732_v50, %v729_v44  ;;  %v3619_v43 = vld [vmem:[#allocation6 + $0x104] ss:$16 sps:$4 sm:$0xff]   ;;  %v3621_v44 = vld [vmem:[#allocation6 + $0x10c] ss:$16 sps:$4 sm:$0xff]   ;;  %v3623_v45 = vld [vmem:[#allocation6 + $0x100] ss:$16 sps:$4 sm:$0xff]  }
 0x167   :  { %v3624_v46 = vld [vmem:[#allocation6 + $0x108] ss:$16 sps:$4 sm:$0xff]   ;;  %v3629_v49 = vld [vmem:[#allocation6 + $0x120] ss:$16 sps:$4 sm:$0xff]  }
 0x168   :  { %1661 = vmatpush1.bf16.msra.mxu1 %v786_v51  ;;  %1950 = vmatpush1.bf16.msra.mxu0 %v802_v52  ;;  %v3630_v50 = vld [vmem:[#allocation6 + $0x128] ss:$16 sps:$4 sm:$0xff]   ;;  %v3631_v51 = vld [vmem:[#allocation6 + $0x144] ss:$16 sps:$4 sm:$0xff]   ;;  %v3633_v52 = vld [vmem:[#allocation6 + $0x14c] ss:$16 sps:$4 sm:$0xff]  }
 0x169   :  { %1662 = vmatprep.subr.bf16.mxu1 %v3997_v41  ;;  %1951 = vmatprep.subr.bf16.mxu0 %v3997_v41 }
 0x16a   :  { %v3467_v53 = vpop.f32.mrb[24].mxu0  ;;  %v3499_v54 = vpop.f32.mrb[24].mxu1 }
 0x16b   :  { %v617_v55 = vpop.f32.mrb[25].mxu0  ;;  %v745_v56 = vpop.f32.mrb[25].mxu1 }
 0x16c   :  { %v3468_v57 = vpop.f32.mrb[26].mxu0  ;;  %v3500_v58 = vpop.f32.mrb[26].mxu1  ;;  %1663 = vmatpush1.bf16.msra.mxu1 %v787_v47  ;;  %1952 = vmatpush1.bf16.msra.mxu0 %v803_v48  ;;  %v3625_v47 = vld [vmem:[#allocation6 + $0x124] ss:$16 sps:$4 sm:$0xff]   ;;  %v3627_v48 = vld [vmem:[#allocation6 + $0x12c] ss:$16 sps:$4 sm:$0xff]  }
 0x16d   :  { %v789_v59 = vpack.c.bf16 %v3468_v57, %v3467_v53  ;;  %v805_v60 = vpack.c.bf16 %v3500_v58, %v3499_v54  ;;  %v620_v61 = vpop.f32.mrb[27].mxu0  ;;  %v748_v62 = vpop.f32.mrb[27].mxu1  ;;  %1664 = vmatprep.subr.bf16.mxu1 %v3997_v41  ;;  %1953 = vmatprep.subr.bf16.mxu0 %v3997_v41  ;;  %v3635_v53 = vld [vmem:[#allocation6 + $0x140] ss:$16 sps:$4 sm:$0xff]   ;;  %v3636_v54 = vld [vmem:[#allocation6 + $0x148] ss:$16 sps:$4 sm:$0xff]  }
 0x16e   :  { %v788_v63 = vpack.c.bf16 %v620_v61, %v617_v55  ;;  %v804_v0 = vpack.c.bf16 %v748_v62, %v745_v56  ;;  %v3637_v55 = vld [vmem:[#allocation6 + $0x164] ss:$16 sps:$4 sm:$0xff]   ;;  %v3639_v56 = vld [vmem:[#allocation6 + $0x16c] ss:$16 sps:$4 sm:$0xff]   ;;  %v3641_v57 = vld [vmem:[#allocation6 + $0x160] ss:$16 sps:$4 sm:$0xff]  }
 0x16f   :  { %v3642_v58 = vld [vmem:[#allocation6 + $0x168] ss:$16 sps:$4 sm:$0xff]   ;;  %v3647_v61 = vld [vmem:[#allocation6 + $0x180] ss:$16 sps:$4 sm:$0xff]  }
 0x170   :  { %1665 = vmatpush1.bf16.msra.mxu1 %v788_v63  ;;  %1954 = vmatpush1.bf16.msra.mxu0 %v804_v0  ;;  %v3648_v62 = vld [vmem:[#allocation6 + $0x188] ss:$16 sps:$4 sm:$0xff]   ;;  %v3649_v63 = vld [vmem:[#allocation6 + $0x1a4] ss:$16 sps:$4 sm:$0xff]   ;;  %v3651_v0 = vld [vmem:[#allocation6 + $0x1ac] ss:$16 sps:$4 sm:$0xff]  }
 0x171   :  { %1666 = vmatprep.subr.bf16.mxu1 %v3997_v41  ;;  %1955 = vmatprep.subr.bf16.mxu0 %v3997_v41 }
 0x172   :  { %v3471_v1 = vpop.f32.mrb[28].mxu0  ;;  %v3503_v2 = vpop.f32.mrb[28].mxu1 }
 0x173   :  { %v633_v3 = vpop.f32.mrb[29].mxu0  ;;  %v761_v4 = vpop.f32.mrb[29].mxu1 }
 0x174   :  { %v3472_v5 = vpop.f32.mrb[30].mxu0  ;;  %v3504_v6 = vpop.f32.mrb[30].mxu1  ;;  %1667 = vmatpush1.bf16.msra.mxu1 %v789_v59  ;;  %1956 = vmatpush1.bf16.msra.mxu0 %v805_v60  ;;  %v3643_v59 = vld [vmem:[#allocation6 + $0x184] ss:$16 sps:$4 sm:$0xff]   ;;  %v3645_v60 = vld [vmem:[#allocation6 + $0x18c] ss:$16 sps:$4 sm:$0xff]  }
 0x175   :  { %v791_v7 = vpack.c.bf16 %v3472_v5, %v3471_v1  ;;  %v807_v8 = vpack.c.bf16 %v3504_v6, %v3503_v2  ;;  %v636_v9 = vpop.f32.mrb[31].mxu0  ;;  %v764_v10 = vpop.f32.mrb[31].mxu1  ;;  %1668 = vmatprep.subr.bf16.mxu1 %v3997_v41  ;;  %1957 = vmatprep.subr.bf16.mxu0 %v3997_v41  ;;  %v3653_v1 = vld [vmem:[#allocation6 + $0x1a0] ss:$16 sps:$4 sm:$0xff]   ;;  %v3654_v2 = vld [vmem:[#allocation6 + $0x1a8] ss:$16 sps:$4 sm:$0xff]  }
 0x176   :  { %v790_v11 = vpack.c.bf16 %v636_v9, %v633_v3  ;;  %v806_v12 = vpack.c.bf16 %v764_v10, %v761_v4  ;;  %v3655_v3 = vld [vmem:[#allocation6 + $0x1c4] ss:$16 sps:$4 sm:$0xff]   ;;  %v3657_v4 = vld [vmem:[#allocation6 + $0x1cc] ss:$16 sps:$4 sm:$0xff]   ;;  %v3659_v5 = vld [vmem:[#allocation6 + $0x1c0] ss:$16 sps:$4 sm:$0xff]  }
 0x177   :  { %v3660_v6 = vld [vmem:[#allocation6 + $0x1c8] ss:$16 sps:$4 sm:$0xff]   ;;  %v3665_v9 = vld [vmem:[#allocation6 + $0x1e0] ss:$16 sps:$4 sm:$0xff]  }
 0x178   :  { %1669 = vmatpush1.bf16.msra.mxu1 %v790_v11  ;;  %1958 = vmatpush1.bf16.msra.mxu0 %v806_v12  ;;  %v3666_v10 = vld [vmem:[#allocation6 + $0x1e8] ss:$16 sps:$4 sm:$0xff]   ;;  %v3667_v11 = vld [vmem:[#allocation6 + $0x204] ss:$16 sps:$4 sm:$0xff]   ;;  %v3669_v12 = vld [vmem:[#allocation6 + $0x20c] ss:$16 sps:$4 sm:$0xff]  }
 0x179   :  { %1670 = vmatprep.subr.bf16.mxu1 %v3997_v41  ;;  %1959 = vmatprep.subr.bf16.mxu0 %v3997_v41  ;;  %v3588_v41 = vld [vmem:[#allocation6 + $0x48] ss:$16 sps:$4 sm:$0xff]  }
 0x17c   :  { %1671 = vmatpush1.bf16.msra.mxu1 %v791_v7  ;;  %1960 = vmatpush1.bf16.msra.mxu0 %v807_v8  ;;  %v3661_v7 = vld [vmem:[#allocation6 + $0x1e4] ss:$16 sps:$4 sm:$0xff]   ;;  %v3663_v8 = vld [vmem:[#allocation6 + $0x1ec] ss:$16 sps:$4 sm:$0xff]  }
 0x17f   :  { %1673 = vmatmul.mubr.bf16.vlgmr.msra.gmra.mrb[32].mxu1 %v3571_v13  ;;  %1962 = vmatmul.mubr.bf16.vlgmr.msra.gmra.mrb[32].mxu0 %v3574_v14  ;;  %v3671_v13 = vld [vmem:[#allocation6 + $0x200] ss:$16 sps:$4 sm:$0xff]   ;;  %v3672_v14 = vld [vmem:[#allocation6 + $0x208] ss:$16 sps:$4 sm:$0xff]  }
 0x180   :  { %1680 = vmatprep.mubr.bf16.mxu1 %v3577_v15  ;;  %1969 = vmatprep.mubr.bf16.mxu0 %v3579_v16  ;;  %v3673_v15 = vld [vmem:[#allocation6 + $0x224] ss:$16 sps:$4 sm:$0xff]   ;;  %v3675_v16 = vld [vmem:[#allocation6 + $0x22c] ss:$16 sps:$4 sm:$0xff]  }
 0x187   :  { %1681 = vmatmul.mubr.bf16.gmra.mrb[36].mxu1 %v3581_v17  ;;  %1970 = vmatmul.mubr.bf16.gmra.mrb[36].mxu0 %v3582_v18  ;;  %v3677_v17 = vld [vmem:[#allocation6 + $0x220] ss:$16 sps:$4 sm:$0xff]   ;;  %v3678_v18 = vld [vmem:[#allocation6 + $0x228] ss:$16 sps:$4 sm:$0xff]  }
 0x188   :  { %1688 = vmatprep.mubr.bf16.mxu1 %v3583_v19  ;;  %1977 = vmatprep.mubr.bf16.mxu0 %v3585_v20  ;;  %v3679_v19 = vld [vmem:[#allocation6 + $0x244] ss:$16 sps:$4 sm:$0xff]   ;;  %v3681_v20 = vld [vmem:[#allocation6 + $0x24c] ss:$16 sps:$4 sm:$0xff]  }
 0x18f   :  { %1689 = vmatmul.mubr.bf16.gmra.mrb[40].mxu1 %v3587_v21  ;;  %1978 = vmatmul.mubr.bf16.gmra.mrb[40].mxu0 %v3588_v41  ;;  %v3683_v21 = vld [vmem:[#allocation6 + $0x240] ss:$16 sps:$4 sm:$0xff]   ;;  %v3684_v41 = vld [vmem:[#allocation6 + $0x248] ss:$16 sps:$4 sm:$0xff]  }
 0x190   :  { %1696 = vmatprep.mubr.bf16.mxu1 %v3589_v22  ;;  %1985 = vmatprep.mubr.bf16.mxu0 %v3591_v23  ;;  %v3685_v22 = vld [vmem:[#allocation6 + $0x264] ss:$16 sps:$4 sm:$0xff]   ;;  %v3687_v23 = vld [vmem:[#allocation6 + $0x26c] ss:$16 sps:$4 sm:$0xff]  }
 0x197   :  { %1697 = vmatmul.mubr.bf16.gmra.mrb[44].mxu1 %v3593_v24  ;;  %1986 = vmatmul.mubr.bf16.gmra.mrb[44].mxu0 %v3594_v25  ;;  %v3689_v24 = vld [vmem:[#allocation6 + $0x260] ss:$16 sps:$4 sm:$0xff]   ;;  %v3690_v25 = vld [vmem:[#allocation6 + $0x268] ss:$16 sps:$4 sm:$0xff]  }
 0x198   :  { %1704 = vmatprep.mubr.bf16.mxu1 %v3595_v26  ;;  %1993 = vmatprep.mubr.bf16.mxu0 %v3597_v27  ;;  %v3691_v26 = vld [vmem:[#allocation6 + $0x284] ss:$16 sps:$4 sm:$0xff]   ;;  %v3693_v27 = vld [vmem:[#allocation6 + $0x28c] ss:$16 sps:$4 sm:$0xff]  }
 0x19f   :  { %1705 = vmatmul.mubr.bf16.gmra.mrb[48].mxu1 %v3599_v28  ;;  %1994 = vmatmul.mubr.bf16.gmra.mrb[48].mxu0 %v3600_v29  ;;  %v3695_v28 = vld [vmem:[#allocation6 + $0x280] ss:$16 sps:$4 sm:$0xff]   ;;  %v3696_v29 = vld [vmem:[#allocation6 + $0x288] ss:$16 sps:$4 sm:$0xff]  }
 0x1a0   :  { %1712 = vmatprep.mubr.bf16.mxu1 %v3601_v30  ;;  %2001 = vmatprep.mubr.bf16.mxu0 %v3603_v31  ;;  %v3697_v30 = vld [vmem:[#allocation6 + $0x2a4] ss:$16 sps:$4 sm:$0xff]   ;;  %v3699_v31 = vld [vmem:[#allocation6 + $0x2ac] ss:$16 sps:$4 sm:$0xff]  }
 0x1a7   :  { %1713 = vmatmul.mubr.bf16.gmra.mrb[52].mxu1 %v3605_v32  ;;  %2002 = vmatmul.mubr.bf16.gmra.mrb[52].mxu0 %v3606_v33  ;;  %v3701_v32 = vld [vmem:[#allocation6 + $0x2a0] ss:$16 sps:$4 sm:$0xff]   ;;  %v3702_v33 = vld [vmem:[#allocation6 + $0x2a8] ss:$16 sps:$4 sm:$0xff]  }
 0x1a8   :  { %1720 = vmatprep.mubr.bf16.mxu1 %v3607_v34  ;;  %2009 = vmatprep.mubr.bf16.mxu0 %v3609_v35  ;;  %v3703_v34 = vld [vmem:[#allocation6 + $0x2c4] ss:$16 sps:$4 sm:$0xff]   ;;  %v3705_v35 = vld [vmem:[#allocation6 + $0x2cc] ss:$16 sps:$4 sm:$0xff]  }
 0x1af   :  { %1721 = vmatmul.mubr.bf16.gmra.mrb[56].mxu1 %v3611_v36  ;;  %2010 = vmatmul.mubr.bf16.gmra.mrb[56].mxu0 %v3612_v37  ;;  %v3707_v36 = vld [vmem:[#allocation6 + $0x2c0] ss:$16 sps:$4 sm:$0xff]   ;;  %v3708_v37 = vld [vmem:[#allocation6 + $0x2c8] ss:$16 sps:$4 sm:$0xff]  }
 0x1b0   :  { %1728 = vmatprep.mubr.bf16.mxu1 %v3613_v38  ;;  %2017 = vmatprep.mubr.bf16.mxu0 %v3615_v39  ;;  %v3709_v38 = vld [vmem:[#allocation6 + $0x2e4] ss:$16 sps:$4 sm:$0xff]   ;;  %v3711_v39 = vld [vmem:[#allocation6 + $0x2ec] ss:$16 sps:$4 sm:$0xff]  }
 0x1b7   :  { %1729 = vmatmul.mubr.bf16.gmra.mrb[60].mxu1 %v3617_v40  ;;  %2018 = vmatmul.mubr.bf16.gmra.mrb[60].mxu0 %v3618_v42  ;;  %v3713_v40 = vld [vmem:[#allocation6 + $0x2e0] ss:$16 sps:$4 sm:$0xff]   ;;  %v3714_v42 = vld [vmem:[#allocation6 + $0x2e8] ss:$16 sps:$4 sm:$0xff]  }
 0x1b8   :  { %1736 = vmatprep.mubr.bf16.mxu1 %v3619_v43  ;;  %2025 = vmatprep.mubr.bf16.mxu0 %v3621_v44  ;;  %v3715_v43 = vld [vmem:[#allocation6 + $0x304] ss:$16 sps:$4 sm:$0xff]   ;;  %v3717_v44 = vld [vmem:[#allocation6 + $0x30c] ss:$16 sps:$4 sm:$0xff]  }
 0x1bf   :  { %1737 = vmatmul.mubr.bf16.gmra.mrb[64].mxu1 %v3623_v45  ;;  %2026 = vmatmul.mubr.bf16.gmra.mrb[64].mxu0 %v3624_v46  ;;  %v3719_v45 = vld [vmem:[#allocation6 + $0x300] ss:$16 sps:$4 sm:$0xff]   ;;  %v3720_v46 = vld [vmem:[#allocation6 + $0x308] ss:$16 sps:$4 sm:$0xff]  }
 0x1c0   :  { %1744 = vmatprep.mubr.bf16.mxu1 %v3625_v47  ;;  %2033 = vmatprep.mubr.bf16.mxu0 %v3627_v48  ;;  %v3721_v47 = vld [vmem:[#allocation6 + $0x324] ss:$16 sps:$4 sm:$0xff]   ;;  %v3723_v48 = vld [vmem:[#allocation6 + $0x32c] ss:$16 sps:$4 sm:$0xff]  }
 0x1c7   :  { %1745 = vmatmul.mubr.bf16.gmra.mrb[68].mxu1 %v3629_v49  ;;  %2034 = vmatmul.mubr.bf16.gmra.mrb[68].mxu0 %v3630_v50  ;;  %v3725_v49 = vld [vmem:[#allocation6 + $0x320] ss:$16 sps:$4 sm:$0xff]   ;;  %v3726_v50 = vld [vmem:[#allocation6 + $0x328] ss:$16 sps:$4 sm:$0xff]  }
 0x1c8   :  { %1752 = vmatprep.mubr.bf16.mxu1 %v3631_v51  ;;  %2041 = vmatprep.mubr.bf16.mxu0 %v3633_v52  ;;  %v3727_v51 = vld [vmem:[#allocation6 + $0x344] ss:$16 sps:$4 sm:$0xff]   ;;  %v3729_v52 = vld [vmem:[#allocation6 + $0x34c] ss:$16 sps:$4 sm:$0xff]  }
 0x1cf   :  { %1753 = vmatmul.mubr.bf16.gmra.mrb[72].mxu1 %v3635_v53  ;;  %2042 = vmatmul.mubr.bf16.gmra.mrb[72].mxu0 %v3636_v54  ;;  %v3731_v53 = vld [vmem:[#allocation6 + $0x340] ss:$16 sps:$4 sm:$0xff]   ;;  %v3732_v54 = vld [vmem:[#allocation6 + $0x348] ss:$16 sps:$4 sm:$0xff]  }
 0x1d0   :  { %1760 = vmatprep.mubr.bf16.mxu1 %v3637_v55  ;;  %2049 = vmatprep.mubr.bf16.mxu0 %v3639_v56  ;;  %v3733_v55 = vld [vmem:[#allocation6 + $0x364] ss:$16 sps:$4 sm:$0xff]   ;;  %v3735_v56 = vld [vmem:[#allocation6 + $0x36c] ss:$16 sps:$4 sm:$0xff]  }
 0x1d7   :  { %1761 = vmatmul.mubr.bf16.gmra.mrb[76].mxu1 %v3641_v57  ;;  %2050 = vmatmul.mubr.bf16.gmra.mrb[76].mxu0 %v3642_v58  ;;  %v808_v58 = vld [vmem:[#allocation2] sm:$0xff] }
 0x1d8   :  { %1768 = vmatprep.mubr.bf16.mxu1 %v3643_v59  ;;  %2057 = vmatprep.mubr.bf16.mxu0 %v3645_v60  ;;  %v3737_v60 = vld [vmem:[#allocation6 + $0x360] ss:$16 sps:$4 sm:$0xff]  }
 0x1df   :  { %1769 = vmatmul.mubr.bf16.gmra.mrb[80].mxu1 %v3647_v61  ;;  %2058 = vmatmul.mubr.bf16.gmra.mrb[80].mxu0 %v3648_v62 }
 0x1e0   :  { %1776 = vmatprep.mubr.bf16.mxu1 %v3649_v63  ;;  %2065 = vmatprep.mubr.bf16.mxu0 %v3651_v0  ;;  %v809_v0 = vld [vmem:[#allocation2 + $0x8] sm:$0xff] }
 0x1e7   :  { %1777 = vmatmul.mubr.bf16.gmra.mrb[84].mxu1 %v3653_v1  ;;  %2066 = vmatmul.mubr.bf16.gmra.mrb[84].mxu0 %v3654_v2  ;;  %v3738_v1 = vld [vmem:[#allocation6 + $0x368] ss:$16 sps:$4 sm:$0xff]  }
 0x1e8   :  { %1784 = vmatprep.mubr.bf16.mxu1 %v3655_v3  ;;  %2073 = vmatprep.mubr.bf16.mxu0 %v3657_v4  ;;  %v3739_v4 = vld [vmem:[#allocation6 + $0x384] ss:$16 sps:$4 sm:$0xff]  }
 0x1ef   :  { %1785 = vmatmul.mubr.bf16.gmra.mrb[88].mxu1 %v3659_v5  ;;  %2074 = vmatmul.mubr.bf16.gmra.mrb[88].mxu0 %v3660_v6  ;;  %v3741_v5 = vld [vmem:[#allocation6 + $0x38c] ss:$16 sps:$4 sm:$0xff]  }
 0x1f0   :  { %1792 = vmatprep.mubr.bf16.mxu1 %v3661_v7  ;;  %2081 = vmatprep.mubr.bf16.mxu0 %v3663_v8 }
 0x1f7   :  { %1793 = vmatmul.mubr.bf16.gmra.mrb[92].mxu1 %v3665_v9  ;;  %2082 = vmatmul.mubr.bf16.gmra.mrb[92].mxu0 %v3666_v10 }
 0x1f8   :  { %1800 = vmatprep.mubr.bf16.mxu1 %v3667_v11  ;;  %2089 = vmatprep.mubr.bf16.mxu0 %v3669_v12  ;;  %v810_v12 = vld [vmem:[#allocation2 + $0x10] sm:$0xff] }
 0x1ff   :  { %1801 = vmatmul.mubr.bf16.gmra.mrb[96].mxu1 %v3671_v13  ;;  %2090 = vmatmul.mubr.bf16.gmra.mrb[96].mxu0 %v3672_v14  ;;  %v3743_v14 = vld [vmem:[#allocation6 + $0x380] ss:$16 sps:$4 sm:$0xff]  }
 0x200   :  { %1808 = vmatprep.mubr.bf16.mxu1 %v3673_v15  ;;  %2097 = vmatprep.mubr.bf16.mxu0 %v3675_v16 }
 0x207   :  { %1809 = vmatmul.mubr.bf16.gmra.mrb[100].mxu1 %v3677_v17  ;;  %2098 = vmatmul.mubr.bf16.gmra.mrb[100].mxu0 %v3678_v18  ;;  %v811_v18 = vld [vmem:[#allocation2 + $0x18] sm:$0xff] }
 0x208   :  { %1816 = vmatprep.mubr.bf16.mxu1 %v3679_v19  ;;  %2105 = vmatprep.mubr.bf16.mxu0 %v3681_v20  ;;  %v3744_v19 = vld [vmem:[#allocation6 + $0x388] ss:$16 sps:$4 sm:$0xff]  }
 0x20f   :  { %1817 = vmatmul.mubr.bf16.gmra.mrb[104].mxu1 %v3683_v21  ;;  %2106 = vmatmul.mubr.bf16.gmra.mrb[104].mxu0 %v3684_v41  ;;  %v3745_v41 = vld [vmem:[#allocation6 + $0x3a4] ss:$16 sps:$4 sm:$0xff]  }
 0x210   :  { %1824 = vmatprep.mubr.bf16.mxu1 %v3685_v22  ;;  %2113 = vmatprep.mubr.bf16.mxu0 %v3687_v23  ;;  %v3747_v22 = vld [vmem:[#allocation6 + $0x3ac] ss:$16 sps:$4 sm:$0xff]  }
 0x217   :  { %1825 = vmatmul.mubr.bf16.gmra.mrb[108].mxu1 %v3689_v24  ;;  %2114 = vmatmul.mubr.bf16.gmra.mrb[108].mxu0 %v3690_v25 }
 0x218   :  { %1832 = vmatprep.mubr.bf16.mxu1 %v3691_v26  ;;  %2121 = vmatprep.mubr.bf16.mxu0 %v3693_v27 }
 0x21f   :  { %1833 = vmatmul.mubr.bf16.gmra.mrb[112].mxu1 %v3695_v28  ;;  %2122 = vmatmul.mubr.bf16.gmra.mrb[112].mxu0 %v3696_v29  ;;  %v812_v29 = vld [vmem:[#allocation2 + $0x20] sm:$0xff] }
 0x220   :  { %1840 = vmatprep.mubr.bf16.mxu1 %v3697_v30  ;;  %2129 = vmatprep.mubr.bf16.mxu0 %v3699_v31  ;;  %v3749_v31 = vld [vmem:[#allocation6 + $0x3a0] ss:$16 sps:$4 sm:$0xff]  }
 0x227   :  { %1841 = vmatmul.mubr.bf16.gmra.mrb[116].mxu1 %v3701_v32  ;;  %2130 = vmatmul.mubr.bf16.gmra.mrb[116].mxu0 %v3702_v33 }
 0x228   :  { %1848 = vmatprep.mubr.bf16.mxu1 %v3703_v34  ;;  %2137 = vmatprep.mubr.bf16.mxu0 %v3705_v35  ;;  %v813_v35 = vld [vmem:[#allocation2 + $0x28] sm:$0xff] }
 0x22f   :  { %1849 = vmatmul.mubr.bf16.gmra.mrb[120].mxu1 %v3707_v36  ;;  %2138 = vmatmul.mubr.bf16.gmra.mrb[120].mxu0 %v3708_v37  ;;  %v3750_v36 = vld [vmem:[#allocation6 + $0x3a8] ss:$16 sps:$4 sm:$0xff]  }
 0x230   :  { %1856 = vmatprep.mubr.bf16.mxu1 %v3709_v38  ;;  %2145 = vmatprep.mubr.bf16.mxu0 %v3711_v39  ;;  %v3751_v39 = vld [vmem:[#allocation6 + $0x3c4] ss:$16 sps:$4 sm:$0xff]  }
 0x237   :  { %1857 = vmatmul.mubr.bf16.gmra.mrb[124].mxu1 %v3713_v40  ;;  %2146 = vmatmul.mubr.bf16.gmra.mrb[124].mxu0 %v3714_v42  ;;  %v3753_v40 = vld [vmem:[#allocation6 + $0x3cc] ss:$16 sps:$4 sm:$0xff]  }
 0x238   :  { %1864 = vmatprep.mubr.bf16.mxu1 %v3715_v43  ;;  %2153 = vmatprep.mubr.bf16.mxu0 %v3717_v44 }
 0x23f   :  { %1865 = vmatmul.mubr.bf16.gmra.mrb[128].mxu1 %v3719_v45  ;;  %2154 = vmatmul.mubr.bf16.gmra.mrb[128].mxu0 %v3720_v46 }
 0x240   :  { %1872 = vmatprep.mubr.bf16.mxu1 %v3721_v47  ;;  %2161 = vmatprep.mubr.bf16.mxu0 %v3723_v48  ;;  %v814_v48 = vld [vmem:[#allocation2 + $0x30] sm:$0xff] }
 0x247   :  { %1873 = vmatmul.mubr.bf16.gmra.mrb[132].mxu1 %v3725_v49  ;;  %2162 = vmatmul.mubr.bf16.gmra.mrb[132].mxu0 %v3726_v50  ;;  %v3755_v50 = vld [vmem:[#allocation6 + $0x3c0] ss:$16 sps:$4 sm:$0xff]  }
 0x248   :  { %1880 = vmatprep.mubr.bf16.mxu1 %v3727_v51  ;;  %2169 = vmatprep.mubr.bf16.mxu0 %v3729_v52 }
 0x24f   :  { %1881 = vmatmul.mubr.bf16.gmra.mrb[136].mxu1 %v3731_v53  ;;  %2170 = vmatmul.mubr.bf16.gmra.mrb[136].mxu0 %v3732_v54  ;;  %v815_v54 = vld [vmem:[#allocation2 + $0x38] sm:$0xff] }
 0x250   :  { %1888 = vmatprep.mubr.bf16.mxu1 %v3733_v55  ;;  %2177 = vmatprep.mubr.bf16.mxu0 %v3735_v56  ;;  %v3756_v55 = vld [vmem:[#allocation6 + $0x3c8] ss:$16 sps:$4 sm:$0xff]  }
 0x252   :  { %v1674_v57 = vpop.f32.mrb[32].mxu1  ;;  %v1963_v59 = vpop.f32.mrb[32].mxu0 }
 0x253   :  { %v1964_v61 = vadd.f32 %v1963_v59, %v1674_v57  ;;  %v1676_v62 = vpop.f32.mrb[33].mxu1  ;;  %v1965_v63 = vpop.f32.mrb[33].mxu0  ;;  %v3759_v59 = vld [vmem:[#allocation6 + $0x3ec] ss:$16 sps:$4 sm:$0xff]  }
 0x254   :  { %v1677_v2 = vpop.f32.mrb[34].mxu1  ;;  %v1966_v3 = vpop.f32.mrb[34].mxu0 }
 0x255   :  { %v2218_v6 = vadd.f32 %v1964_v61, %v808_v58  ;;  %v1967_v7 = vadd.f32 %v1966_v3, %v1677_v2  ;;  %v1679_v8 = vpop.f32.mrb[35].mxu1  ;;  %v1968_v9 = vpop.f32.mrb[35].mxu0  ;;  %v3757_v58 = vld [vmem:[#allocation6 + $0x3e4] ss:$16 sps:$4 sm:$0xff]  }
 0x256   :  { %v816_v2 = vld [vmem:[#allocation2 + $0x40] sm:$0xff]  ;;  %v3762_v8 = vld [vmem:[#allocation6 + $0x3e8] ss:$16 sps:$4 sm:$0xff]  }
 0x257   :  { %2282 = vst [vmem:[#allocation2] sm:$0xff] %v2218_v6  ;;  %v2219_v10 = vadd.f32 %v1967_v7, %v809_v0  ;;  %1889 = vmatmul.mubr.bf16.gmra.mrb[140].mxu1 %v3737_v60  ;;  %2178 = vmatmul.mubr.bf16.gmra.mrb[140].mxu0 %v3738_v1  ;;  %v3761_v7 = vld [vmem:[#allocation6 + $0x3e0] ss:$16 sps:$4 sm:$0xff]  }
 0x258   :  { %1896 = vmatprep.mubr.bf16.mxu1 %v3739_v4  ;;  %2185 = vmatprep.mubr.bf16.mxu0 %v3741_v5 }
 0x259   :  { %2283 = vst [vmem:[#allocation2 + $0x8] sm:$0xff] %v2219_v10  ;;  %v817_v10 = vld [vmem:[#allocation2 + $0x48] sm:$0xff] }
 0x25a   :  { %v1682_v11 = vpop.f32.mrb[36].mxu1  ;;  %v1971_v13 = vpop.f32.mrb[36].mxu0 }
 0x25b   :  { %v1972_v15 = vadd.f32 %v1971_v13, %v1682_v11  ;;  %v1684_v16 = vpop.f32.mrb[37].mxu1  ;;  %v1973_v17 = vpop.f32.mrb[37].mxu0 }
 0x25c   :  { %v1685_v20 = vpop.f32.mrb[38].mxu1  ;;  %v1974_v21 = vpop.f32.mrb[38].mxu0 }
 0x25d   :  { %v2220_v23 = vadd.f32 %v1972_v15, %v810_v12  ;;  %v1975_v24 = vadd.f32 %v1974_v21, %v1685_v20  ;;  %v1687_v25 = vpop.f32.mrb[39].mxu1  ;;  %v1976_v26 = vpop.f32.mrb[39].mxu0 }
 0x25f   :  { %2284 = vst [vmem:[#allocation2 + $0x10] sm:$0xff] %v2220_v23  ;;  %v2221_v27 = vadd.f32 %v1975_v24, %v811_v18  ;;  %1897 = vmatmul.mubr.bf16.gmra.mrb[144].mxu1 %v3743_v14  ;;  %2186 = vmatmul.mubr.bf16.gmra.mrb[144].mxu0 %v3744_v19  ;;  %v818_v18 = vld [vmem:[#allocation2 + $0x50] sm:$0xff]  ;;  %v819_v23 = vld [vmem:[#allocation2 + $0x58] sm:$0xff] }
 0x260   :  { %1904 = vmatprep.mubr.bf16.mxu1 %v3745_v41  ;;  %2193 = vmatprep.mubr.bf16.mxu0 %v3747_v22 }
 0x261   :  { %2285 = vst [vmem:[#allocation2 + $0x18] sm:$0xff] %v2221_v27 }
 0x262   :  { %v1690_v28 = vpop.f32.mrb[40].mxu1  ;;  %v1979_v30 = vpop.f32.mrb[40].mxu0 }
 0x263   :  { %v1980_v32 = vadd.f32 %v1979_v30, %v1690_v28  ;;  %v1692_v33 = vpop.f32.mrb[41].mxu1  ;;  %v1981_v34 = vpop.f32.mrb[41].mxu0 }
 0x264   :  { %v1693_v37 = vpop.f32.mrb[42].mxu1  ;;  %v1982_v38 = vpop.f32.mrb[42].mxu0 }
 0x265   :  { %v2222_v42 = vadd.f32 %v1980_v32, %v812_v29  ;;  %v1983_v43 = vadd.f32 %v1982_v38, %v1693_v37  ;;  %v1695_v44 = vpop.f32.mrb[43].mxu1  ;;  %v1984_v45 = vpop.f32.mrb[43].mxu0  ;;  %v821_v37 = vld [vmem:[#allocation2 + $0x68] sm:$0xff] }
 0x267   :  { %2286 = vst [vmem:[#allocation2 + $0x20] sm:$0xff] %v2222_v42  ;;  %v2223_v46 = vadd.f32 %v1983_v43, %v813_v35  ;;  %1905 = vmatmul.mubr.bf16.gmra.mrb[148].mxu1 %v3749_v31  ;;  %2194 = vmatmul.mubr.bf16.gmra.mrb[148].mxu0 %v3750_v36  ;;  %v820_v31 = vld [vmem:[#allocation2 + $0x60] sm:$0xff] }
 0x268   :  { %1912 = vmatprep.mubr.bf16.mxu1 %v3751_v39  ;;  %2201 = vmatprep.mubr.bf16.mxu0 %v3753_v40 }
 0x269   :  { %2287 = vst [vmem:[#allocation2 + $0x28] sm:$0xff] %v2223_v46  ;;  %v822_v46 = vld [vmem:[#allocation2 + $0x70] sm:$0xff] }
 0x26a   :  { %v1698_v47 = vpop.f32.mrb[44].mxu1  ;;  %v1987_v49 = vpop.f32.mrb[44].mxu0 }
 0x26b   :  { %v1988_v51 = vadd.f32 %v1987_v49, %v1698_v47  ;;  %v1700_v52 = vpop.f32.mrb[45].mxu1  ;;  %v1989_v53 = vpop.f32.mrb[45].mxu0 }
 0x26c   :  { %v1701_v56 = vpop.f32.mrb[46].mxu1  ;;  %v1990_v57 = vpop.f32.mrb[46].mxu0  ;;  %v823_v52 = vld [vmem:[#allocation2 + $0x78] sm:$0xff] }
 0x26d   :  { %v2224_v60 = vadd.f32 %v1988_v51, %v814_v48  ;;  %v1991_v61 = vadd.f32 %v1990_v57, %v1701_v56  ;;  %v1703_v62 = vpop.f32.mrb[47].mxu1  ;;  %v1992_v63 = vpop.f32.mrb[47].mxu0 }
 0x26f   :  { %2288 = vst [vmem:[#allocation2 + $0x30] sm:$0xff] %v2224_v60  ;;  %v2225_v0 = vadd.f32 %v1991_v61, %v815_v54  ;;  %1913 = vmatmul.mubr.bf16.gmra.mrb[152].mxu1 %v3755_v50  ;;  %2202 = vmatmul.mubr.bf16.gmra.mrb[152].mxu0 %v3756_v55  ;;  %v824_v60 = vld [vmem:[#allocation2 + $0x80] sm:$0xff] }
 0x270   :  { %1920 = vmatprep.mubr.bf16.mxu1 %v3757_v58  ;;  %2209 = vmatprep.mubr.bf16.mxu0 %v3759_v59 }
 0x271   :  { %2289 = vst [vmem:[#allocation2 + $0x38] sm:$0xff] %v2225_v0 }
 0x272   :  { %v1706_v1 = vpop.f32.mrb[48].mxu1  ;;  %v1995_v3 = vpop.f32.mrb[48].mxu0 }
 0x273   :  { %v1996_v4 = vadd.f32 %v1995_v3, %v1706_v1  ;;  %v1708_v5 = vpop.f32.mrb[49].mxu1  ;;  %v1997_v6 = vpop.f32.mrb[49].mxu0 }
 0x274   :  { %v1709_v9 = vpop.f32.mrb[50].mxu1  ;;  %v1998_v11 = vpop.f32.mrb[50].mxu0 }
 0x275   :  { %v2226_v12 = vadd.f32 %v1996_v4, %v816_v2  ;;  %v1999_v13 = vadd.f32 %v1998_v11, %v1709_v9  ;;  %v1711_v14 = vpop.f32.mrb[51].mxu1  ;;  %v2000_v15 = vpop.f32.mrb[51].mxu0  ;;  %v825_v2 = vld [vmem:[#allocation2 + $0x88] sm:$0xff] }
 0x277   :  { %2290 = vst [vmem:[#allocation2 + $0x40] sm:$0xff] %v2226_v12  ;;  %v2227_v16 = vadd.f32 %v1999_v13, %v817_v10  ;;  %1921 = vmatmul.mubr.bf16.gmra.mrb[156].mxu1 %v3761_v7  ;;  %2210 = vmatmul.mubr.bf16.gmra.mrb[156].mxu0 %v3762_v8  ;;  %v826_v10 = vld [vmem:[#allocation2 + $0x90] sm:$0xff] }
 0x279   :  { %2291 = vst [vmem:[#allocation2 + $0x48] sm:$0xff] %v2227_v16  ;;  %v827_v16 = vld [vmem:[#allocation2 + $0x98] sm:$0xff] }
 0x27a   :  { %v1714_v17 = vpop.f32.mrb[52].mxu1  ;;  %v2003_v19 = vpop.f32.mrb[52].mxu0 }
 0x27b   :  { %v2004_v20 = vadd.f32 %v2003_v19, %v1714_v17  ;;  %v1716_v21 = vpop.f32.mrb[53].mxu1  ;;  %v2005_v41 = vpop.f32.mrb[53].mxu0 }
 0x27c   :  { %v1717_v22 = vpop.f32.mrb[54].mxu1  ;;  %v2006_v24 = vpop.f32.mrb[54].mxu0 }
 0x27d   :  { %v2228_v25 = vadd.f32 %v2004_v20, %v818_v18  ;;  %v2007_v26 = vadd.f32 %v2006_v24, %v1717_v22  ;;  %v1719_v27 = vpop.f32.mrb[55].mxu1  ;;  %v2008_v28 = vpop.f32.mrb[55].mxu0 }
 0x27f   :  { %2292 = vst [vmem:[#allocation2 + $0x50] sm:$0xff] %v2228_v25  ;;  %v2229_v29 = vadd.f32 %v2007_v26, %v819_v23  ;;  %v828_v23 = vld [vmem:[#allocation2 + $0xa0] sm:$0xff] }
 0x281   :  { %2293 = vst [vmem:[#allocation2 + $0x58] sm:$0xff] %v2229_v29  ;;  %v829_v29 = vld [vmem:[#allocation2 + $0xa8] sm:$0xff] }
 0x282   :  { %v1722_v30 = vpop.f32.mrb[56].mxu1  ;;  %v2011_v32 = vpop.f32.mrb[56].mxu0 }
 0x283   :  { %v2012_v33 = vadd.f32 %v2011_v32, %v1722_v30  ;;  %v1724_v34 = vpop.f32.mrb[57].mxu1  ;;  %v2013_v35 = vpop.f32.mrb[57].mxu0 }
 0x284   :  { %v1725_v36 = vpop.f32.mrb[58].mxu1  ;;  %v2014_v38 = vpop.f32.mrb[58].mxu0 }
 0x285   :  { %v2230_v39 = vadd.f32 %v2012_v33, %v820_v31  ;;  %v2015_v40 = vadd.f32 %v2014_v38, %v1725_v36  ;;  %v1727_v42 = vpop.f32.mrb[59].mxu1  ;;  %v2016_v43 = vpop.f32.mrb[59].mxu0 }
 0x287   :  { %2294 = vst [vmem:[#allocation2 + $0x60] sm:$0xff] %v2230_v39  ;;  %v2231_v44 = vadd.f32 %v2015_v40, %v821_v37  ;;  %v830_v37 = vld [vmem:[#allocation2 + $0xb0] sm:$0xff] }
 0x289   :  { %2295 = vst [vmem:[#allocation2 + $0x68] sm:$0xff] %v2231_v44  ;;  %v831_v44 = vld [vmem:[#allocation2 + $0xb8] sm:$0xff] }
 0x28a   :  { %v1730_v45 = vpop.f32.mrb[60].mxu1  ;;  %v2019_v47 = vpop.f32.mrb[60].mxu0 }
 0x28b   :  { %v2020_v48 = vadd.f32 %v2019_v47, %v1730_v45  ;;  %v1732_v49 = vpop.f32.mrb[61].mxu1  ;;  %v2021_v50 = vpop.f32.mrb[61].mxu0 }
 0x28c   :  { %v1733_v51 = vpop.f32.mrb[62].mxu1  ;;  %v2022_v53 = vpop.f32.mrb[62].mxu0 }
 0x28d   :  { %v2232_v54 = vadd.f32 %v2020_v48, %v822_v46  ;;  %v2023_v55 = vadd.f32 %v2022_v53, %v1733_v51  ;;  %v1735_v56 = vpop.f32.mrb[63].mxu1  ;;  %v2024_v57 = vpop.f32.mrb[63].mxu0 }
 0x28f   :  { %2296 = vst [vmem:[#allocation2 + $0x70] sm:$0xff] %v2232_v54  ;;  %v2233_v58 = vadd.f32 %v2023_v55, %v823_v52  ;;  %v832_v52 = vld [vmem:[#allocation2 + $0xc0] sm:$0xff] }
 0x291   :  { %2297 = vst [vmem:[#allocation2 + $0x78] sm:$0xff] %v2233_v58  ;;  %v833_v58 = vld [vmem:[#allocation2 + $0xc8] sm:$0xff] }
 0x292   :  { %v1738_v59 = vpop.f32.mrb[64].mxu1  ;;  %v2027_v61 = vpop.f32.mrb[64].mxu0 }
 0x293   :  { %v2028_v62 = vadd.f32 %v2027_v61, %v1738_v59  ;;  %v1740_v63 = vpop.f32.mrb[65].mxu1  ;;  %v2029_v0 = vpop.f32.mrb[65].mxu0 }
 0x294   :  { %v1741_v1 = vpop.f32.mrb[66].mxu1  ;;  %v2030_v3 = vpop.f32.mrb[66].mxu0 }
 0x295   :  { %v2234_v4 = vadd.f32 %v2028_v62, %v824_v60  ;;  %v2031_v5 = vadd.f32 %v2030_v3, %v1741_v1  ;;  %v1743_v6 = vpop.f32.mrb[67].mxu1  ;;  %v2032_v7 = vpop.f32.mrb[67].mxu0 }
 0x297   :  { %2298 = vst [vmem:[#allocation2 + $0x80] sm:$0xff] %v2234_v4  ;;  %v2235_v8 = vadd.f32 %v2031_v5, %v825_v2  ;;  %v834_v2 = vld [vmem:[#allocation2 + $0xd0] sm:$0xff] }
 0x299   :  { %2299 = vst [vmem:[#allocation2 + $0x88] sm:$0xff] %v2235_v8  ;;  %v835_v8 = vld [vmem:[#allocation2 + $0xd8] sm:$0xff] }
 0x29a   :  { %v1746_v9 = vpop.f32.mrb[68].mxu1  ;;  %v2035_v11 = vpop.f32.mrb[68].mxu0 }
 0x29b   :  { %v2036_v12 = vadd.f32 %v2035_v11, %v1746_v9  ;;  %v1748_v13 = vpop.f32.mrb[69].mxu1  ;;  %v2037_v14 = vpop.f32.mrb[69].mxu0 }
 0x29c   :  { %v1749_v15 = vpop.f32.mrb[70].mxu1  ;;  %v2038_v17 = vpop.f32.mrb[70].mxu0 }
 0x29d   :  { %v2236_v18 = vadd.f32 %v2036_v12, %v826_v10  ;;  %v2039_v19 = vadd.f32 %v2038_v17, %v1749_v15  ;;  %v1751_v20 = vpop.f32.mrb[71].mxu1  ;;  %v2040_v21 = vpop.f32.mrb[71].mxu0 }
 0x29f   :  { %2300 = vst [vmem:[#allocation2 + $0x90] sm:$0xff] %v2236_v18  ;;  %v2237_v41 = vadd.f32 %v2039_v19, %v827_v16  ;;  %v836_v16 = vld [vmem:[#allocation2 + $0xe0] sm:$0xff] }
 0x2a1   :  { %2301 = vst [vmem:[#allocation2 + $0x98] sm:$0xff] %v2237_v41  ;;  %v837_v41 = vld [vmem:[#allocation2 + $0xe8] sm:$0xff] }
 0x2a2   :  { %v1754_v22 = vpop.f32.mrb[72].mxu1  ;;  %v2043_v24 = vpop.f32.mrb[72].mxu0 }
 0x2a3   :  { %v2044_v25 = vadd.f32 %v2043_v24, %v1754_v22  ;;  %v1756_v26 = vpop.f32.mrb[73].mxu1  ;;  %v2045_v27 = vpop.f32.mrb[73].mxu0 }
 0x2a4   :  { %v1757_v28 = vpop.f32.mrb[74].mxu1  ;;  %v2046_v30 = vpop.f32.mrb[74].mxu0 }
 0x2a5   :  { %v2238_v31 = vadd.f32 %v2044_v25, %v828_v23  ;;  %v2047_v32 = vadd.f32 %v2046_v30, %v1757_v28  ;;  %v1759_v33 = vpop.f32.mrb[75].mxu1  ;;  %v2048_v34 = vpop.f32.mrb[75].mxu0 }
 0x2a7   :  { %2302 = vst [vmem:[#allocation2 + $0xa0] sm:$0xff] %v2238_v31  ;;  %v2239_v35 = vadd.f32 %v2047_v32, %v829_v29  ;;  %v838_v29 = vld [vmem:[#allocation2 + $0xf0] sm:$0xff] }
 0x2a9   :  { %2303 = vst [vmem:[#allocation2 + $0xa8] sm:$0xff] %v2239_v35  ;;  %v839_v35 = vld [vmem:[#allocation2 + $0xf8] sm:$0xff] }
 0x2aa   :  { %v1762_v36 = vpop.f32.mrb[76].mxu1  ;;  %v2051_v38 = vpop.f32.mrb[76].mxu0 }
 0x2ab   :  { %v2052_v39 = vadd.f32 %v2051_v38, %v1762_v36  ;;  %v1764_v40 = vpop.f32.mrb[77].mxu1  ;;  %v2053_v42 = vpop.f32.mrb[77].mxu0 }
 0x2ac   :  { %v1765_v43 = vpop.f32.mrb[78].mxu1  ;;  %v2054_v45 = vpop.f32.mrb[78].mxu0 }
 0x2ad   :  { %v2240_v46 = vadd.f32 %v2052_v39, %v830_v37  ;;  %v2055_v47 = vadd.f32 %v2054_v45, %v1765_v43  ;;  %v1767_v48 = vpop.f32.mrb[79].mxu1  ;;  %v2056_v49 = vpop.f32.mrb[79].mxu0 }
 0x2af   :  { %2304 = vst [vmem:[#allocation2 + $0xb0] sm:$0xff] %v2240_v46  ;;  %v2241_v50 = vadd.f32 %v2055_v47, %v831_v44  ;;  %v840_v44 = vld [vmem:[#allocation2 + $0x100] sm:$0xff] }
 0x2b1   :  { %2305 = vst [vmem:[#allocation2 + $0xb8] sm:$0xff] %v2241_v50  ;;  %v841_v50 = vld [vmem:[#allocation2 + $0x108] sm:$0xff] }
 0x2b2   :  { %v1770_v51 = vpop.f32.mrb[80].mxu1  ;;  %v2059_v53 = vpop.f32.mrb[80].mxu0 }
 0x2b3   :  { %v2060_v54 = vadd.f32 %v2059_v53, %v1770_v51  ;;  %v1772_v55 = vpop.f32.mrb[81].mxu1  ;;  %v2061_v56 = vpop.f32.mrb[81].mxu0 }
 0x2b4   :  { %v1773_v57 = vpop.f32.mrb[82].mxu1  ;;  %v2062_v59 = vpop.f32.mrb[82].mxu0 }
 0x2b5   :  { %v2242_v60 = vadd.f32 %v2060_v54, %v832_v52  ;;  %v2063_v61 = vadd.f32 %v2062_v59, %v1773_v57  ;;  %v1775_v62 = vpop.f32.mrb[83].mxu1  ;;  %v2064_v63 = vpop.f32.mrb[83].mxu0 }
 0x2b7   :  { %2306 = vst [vmem:[#allocation2 + $0xc0] sm:$0xff] %v2242_v60  ;;  %v2243_v0 = vadd.f32 %v2063_v61, %v833_v58  ;;  %v842_v58 = vld [vmem:[#allocation2 + $0x110] sm:$0xff] }
 0x2b9   :  { %2307 = vst [vmem:[#allocation2 + $0xc8] sm:$0xff] %v2243_v0  ;;  %v843_v0 = vld [vmem:[#allocation2 + $0x118] sm:$0xff] }
 0x2ba   :  { %v1778_v1 = vpop.f32.mrb[84].mxu1  ;;  %v2067_v3 = vpop.f32.mrb[84].mxu0 }
 0x2bb   :  { %v2068_v4 = vadd.f32 %v2067_v3, %v1778_v1  ;;  %v1780_v5 = vpop.f32.mrb[85].mxu1  ;;  %v2069_v6 = vpop.f32.mrb[85].mxu0 }
 0x2bc   :  { %v1781_v7 = vpop.f32.mrb[86].mxu1  ;;  %v2070_v9 = vpop.f32.mrb[86].mxu0 }
 0x2bd   :  { %v2244_v10 = vadd.f32 %v2068_v4, %v834_v2  ;;  %v2071_v11 = vadd.f32 %v2070_v9, %v1781_v7  ;;  %v1783_v12 = vpop.f32.mrb[87].mxu1  ;;  %v2072_v13 = vpop.f32.mrb[87].mxu0 }
 0x2bf   :  { %2308 = vst [vmem:[#allocation2 + $0xd0] sm:$0xff] %v2244_v10  ;;  %v2245_v14 = vadd.f32 %v2071_v11, %v835_v8  ;;  %v844_v8 = vld [vmem:[#allocation2 + $0x120] sm:$0xff] }
 0x2c1   :  { %2309 = vst [vmem:[#allocation2 + $0xd8] sm:$0xff] %v2245_v14  ;;  %v845_v14 = vld [vmem:[#allocation2 + $0x128] sm:$0xff] }
 0x2c2   :  { %v1786_v15 = vpop.f32.mrb[88].mxu1  ;;  %v2075_v17 = vpop.f32.mrb[88].mxu0 }
 0x2c3   :  { %v2076_v18 = vadd.f32 %v2075_v17, %v1786_v15  ;;  %v1788_v19 = vpop.f32.mrb[89].mxu1  ;;  %v2077_v20 = vpop.f32.mrb[89].mxu0 }
 0x2c4   :  { %v1789_v21 = vpop.f32.mrb[90].mxu1  ;;  %v2078_v22 = vpop.f32.mrb[90].mxu0 }
 0x2c5   :  { %v2246_v23 = vadd.f32 %v2076_v18, %v836_v16  ;;  %v2079_v24 = vadd.f32 %v2078_v22, %v1789_v21  ;;  %v1791_v25 = vpop.f32.mrb[91].mxu1  ;;  %v2080_v26 = vpop.f32.mrb[91].mxu0 }
 0x2c7   :  { %2310 = vst [vmem:[#allocation2 + $0xe0] sm:$0xff] %v2246_v23  ;;  %v2247_v27 = vadd.f32 %v2079_v24, %v837_v41  ;;  %v846_v41 = vld [vmem:[#allocation2 + $0x130] sm:$0xff] }
 0x2c9   :  { %2311 = vst [vmem:[#allocation2 + $0xe8] sm:$0xff] %v2247_v27  ;;  %v847_v27 = vld [vmem:[#allocation2 + $0x138] sm:$0xff] }
 0x2ca   :  { %v1794_v28 = vpop.f32.mrb[92].mxu1  ;;  %v2083_v30 = vpop.f32.mrb[92].mxu0 }
 0x2cb   :  { %v2084_v31 = vadd.f32 %v2083_v30, %v1794_v28  ;;  %v1796_v32 = vpop.f32.mrb[93].mxu1  ;;  %v2085_v33 = vpop.f32.mrb[93].mxu0 }
 0x2cc   :  { %v1797_v34 = vpop.f32.mrb[94].mxu1  ;;  %v2086_v36 = vpop.f32.mrb[94].mxu0 }
 0x2cd   :  { %v2248_v37 = vadd.f32 %v2084_v31, %v838_v29  ;;  %v2087_v38 = vadd.f32 %v2086_v36, %v1797_v34  ;;  %v1799_v39 = vpop.f32.mrb[95].mxu1  ;;  %v2088_v40 = vpop.f32.mrb[95].mxu0 }
 0x2cf   :  { %2312 = vst [vmem:[#allocation2 + $0xf0] sm:$0xff] %v2248_v37  ;;  %v2249_v42 = vadd.f32 %v2087_v38, %v839_v35  ;;  %v848_v35 = vld [vmem:[#allocation2 + $0x140] sm:$0xff] }
 0x2d1   :  { %2313 = vst [vmem:[#allocation2 + $0xf8] sm:$0xff] %v2249_v42  ;;  %v849_v42 = vld [vmem:[#allocation2 + $0x148] sm:$0xff] }
 0x2d2   :  { %v1802_v43 = vpop.f32.mrb[96].mxu1  ;;  %v2091_v45 = vpop.f32.mrb[96].mxu0 }
 0x2d3   :  { %v2092_v46 = vadd.f32 %v2091_v45, %v1802_v43  ;;  %v1804_v47 = vpop.f32.mrb[97].mxu1  ;;  %v2093_v48 = vpop.f32.mrb[97].mxu0 }
 0x2d4   :  { %v1805_v49 = vpop.f32.mrb[98].mxu1  ;;  %v2094_v51 = vpop.f32.mrb[98].mxu0 }
 0x2d5   :  { %v2250_v52 = vadd.f32 %v2092_v46, %v840_v44  ;;  %v2095_v53 = vadd.f32 %v2094_v51, %v1805_v49  ;;  %v1807_v54 = vpop.f32.mrb[99].mxu1  ;;  %v2096_v55 = vpop.f32.mrb[99].mxu0 }
 0x2d7   :  { %2314 = vst [vmem:[#allocation2 + $0x100] sm:$0xff] %v2250_v52  ;;  %v2251_v56 = vadd.f32 %v2095_v53, %v841_v50  ;;  %v850_v50 = vld [vmem:[#allocation2 + $0x150] sm:$0xff] }
 0x2d9   :  { %2315 = vst [vmem:[#allocation2 + $0x108] sm:$0xff] %v2251_v56  ;;  %v851_v56 = vld [vmem:[#allocation2 + $0x158] sm:$0xff] }
 0x2da   :  { %v1810_v57 = vpop.f32.mrb[100].mxu1  ;;  %v2099_v59 = vpop.f32.mrb[100].mxu0 }
 0x2db   :  { %v2100_v60 = vadd.f32 %v2099_v59, %v1810_v57  ;;  %v1812_v61 = vpop.f32.mrb[101].mxu1  ;;  %v2101_v62 = vpop.f32.mrb[101].mxu0 }
 0x2dc   :  { %v1813_v63 = vpop.f32.mrb[102].mxu1  ;;  %v2102_v1 = vpop.f32.mrb[102].mxu0 }
 0x2dd   :  { %v2252_v2 = vadd.f32 %v2100_v60, %v842_v58  ;;  %v2103_v3 = vadd.f32 %v2102_v1, %v1813_v63  ;;  %v1815_v4 = vpop.f32.mrb[103].mxu1  ;;  %v2104_v5 = vpop.f32.mrb[103].mxu0 }
 0x2df   :  { %2316 = vst [vmem:[#allocation2 + $0x110] sm:$0xff] %v2252_v2  ;;  %v2253_v6 = vadd.f32 %v2103_v3, %v843_v0  ;;  %v852_v0 = vld [vmem:[#allocation2 + $0x160] sm:$0xff] }
 0x2e1   :  { %2317 = vst [vmem:[#allocation2 + $0x118] sm:$0xff] %v2253_v6  ;;  %v853_v6 = vld [vmem:[#allocation2 + $0x168] sm:$0xff] }
 0x2e2   :  { %v1818_v7 = vpop.f32.mrb[104].mxu1  ;;  %v2107_v9 = vpop.f32.mrb[104].mxu0 }
 0x2e3   :  { %v2108_v10 = vadd.f32 %v2107_v9, %v1818_v7  ;;  %v1820_v11 = vpop.f32.mrb[105].mxu1  ;;  %v2109_v12 = vpop.f32.mrb[105].mxu0 }
 0x2e4   :  { %v1821_v13 = vpop.f32.mrb[106].mxu1  ;;  %v2110_v15 = vpop.f32.mrb[106].mxu0 }
 0x2e5   :  { %v2254_v16 = vadd.f32 %v2108_v10, %v844_v8  ;;  %v2111_v17 = vadd.f32 %v2110_v15, %v1821_v13  ;;  %v1823_v18 = vpop.f32.mrb[107].mxu1  ;;  %v2112_v19 = vpop.f32.mrb[107].mxu0 }
 0x2e7   :  { %2318 = vst [vmem:[#allocation2 + $0x120] sm:$0xff] %v2254_v16  ;;  %v2255_v20 = vadd.f32 %v2111_v17, %v845_v14  ;;  %v854_v14 = vld [vmem:[#allocation2 + $0x170] sm:$0xff] }
 0x2e9   :  { %2319 = vst [vmem:[#allocation2 + $0x128] sm:$0xff] %v2255_v20  ;;  %v855_v20 = vld [vmem:[#allocation2 + $0x178] sm:$0xff] }
 0x2ea   :  { %v1826_v21 = vpop.f32.mrb[108].mxu1  ;;  %v2115_v22 = vpop.f32.mrb[108].mxu0 }
 0x2eb   :  { %v2116_v23 = vadd.f32 %v2115_v22, %v1826_v21  ;;  %v1828_v24 = vpop.f32.mrb[109].mxu1  ;;  %v2117_v25 = vpop.f32.mrb[109].mxu0 }
 0x2ec   :  { %v1829_v26 = vpop.f32.mrb[110].mxu1  ;;  %v2118_v28 = vpop.f32.mrb[110].mxu0 }
 0x2ed   :  { %v2256_v29 = vadd.f32 %v2116_v23, %v846_v41  ;;  %v2119_v30 = vadd.f32 %v2118_v28, %v1829_v26  ;;  %v1831_v31 = vpop.f32.mrb[111].mxu1  ;;  %v2120_v32 = vpop.f32.mrb[111].mxu0 }
 0x2ef   :  { %2320 = vst [vmem:[#allocation2 + $0x130] sm:$0xff] %v2256_v29  ;;  %v2257_v33 = vadd.f32 %v2119_v30, %v847_v27  ;;  %v856_v27 = vld [vmem:[#allocation2 + $0x180] sm:$0xff] }
 0x2f1   :  { %2321 = vst [vmem:[#allocation2 + $0x138] sm:$0xff] %v2257_v33  ;;  %v857_v33 = vld [vmem:[#allocation2 + $0x188] sm:$0xff] }
 0x2f2   :  { %v1834_v34 = vpop.f32.mrb[112].mxu1  ;;  %v2123_v36 = vpop.f32.mrb[112].mxu0 }
 0x2f3   :  { %v2124_v37 = vadd.f32 %v2123_v36, %v1834_v34  ;;  %v1836_v38 = vpop.f32.mrb[113].mxu1  ;;  %v2125_v39 = vpop.f32.mrb[113].mxu0 }
 0x2f4   :  { %v1837_v40 = vpop.f32.mrb[114].mxu1  ;;  %v2126_v43 = vpop.f32.mrb[114].mxu0 }
 0x2f5   :  { %v2258_v44 = vadd.f32 %v2124_v37, %v848_v35  ;;  %v2127_v45 = vadd.f32 %v2126_v43, %v1837_v40  ;;  %v1839_v46 = vpop.f32.mrb[115].mxu1  ;;  %v2128_v47 = vpop.f32.mrb[115].mxu0 }
 0x2f7   :  { %2322 = vst [vmem:[#allocation2 + $0x140] sm:$0xff] %v2258_v44  ;;  %v2259_v48 = vadd.f32 %v2127_v45, %v849_v42  ;;  %v858_v42 = vld [vmem:[#allocation2 + $0x190] sm:$0xff] }
 0x2f9   :  { %2323 = vst [vmem:[#allocation2 + $0x148] sm:$0xff] %v2259_v48  ;;  %v859_v48 = vld [vmem:[#allocation2 + $0x198] sm:$0xff] }
 0x2fa   :  { %v1842_v49 = vpop.f32.mrb[116].mxu1  ;;  %v2131_v51 = vpop.f32.mrb[116].mxu0 }
 0x2fb   :  { %v2132_v52 = vadd.f32 %v2131_v51, %v1842_v49  ;;  %v1844_v53 = vpop.f32.mrb[117].mxu1  ;;  %v2133_v54 = vpop.f32.mrb[117].mxu0 }
 0x2fc   :  { %v1845_v55 = vpop.f32.mrb[118].mxu1  ;;  %v2134_v57 = vpop.f32.mrb[118].mxu0 }
 0x2fd   :  { %v2260_v58 = vadd.f32 %v2132_v52, %v850_v50  ;;  %v2135_v59 = vadd.f32 %v2134_v57, %v1845_v55  ;;  %v1847_v60 = vpop.f32.mrb[119].mxu1  ;;  %v2136_v61 = vpop.f32.mrb[119].mxu0 }
 0x2ff   :  { %2324 = vst [vmem:[#allocation2 + $0x150] sm:$0xff] %v2260_v58  ;;  %v2261_v62 = vadd.f32 %v2135_v59, %v851_v56  ;;  %v860_v56 = vld [vmem:[#allocation2 + $0x1a0] sm:$0xff] }
 0x301   :  { %2325 = vst [vmem:[#allocation2 + $0x158] sm:$0xff] %v2261_v62  ;;  %v861_v62 = vld [vmem:[#allocation2 + $0x1a8] sm:$0xff] }
 0x302   :  { %v1850_v63 = vpop.f32.mrb[120].mxu1  ;;  %v2139_v1 = vpop.f32.mrb[120].mxu0 }
 0x303   :  { %v2140_v2 = vadd.f32 %v2139_v1, %v1850_v63  ;;  %v1852_v3 = vpop.f32.mrb[121].mxu1  ;;  %v2141_v4 = vpop.f32.mrb[121].mxu0 }
 0x304   :  { %v1853_v5 = vpop.f32.mrb[122].mxu1  ;;  %v2142_v7 = vpop.f32.mrb[122].mxu0 }
 0x305   :  { %v2262_v8 = vadd.f32 %v2140_v2, %v852_v0  ;;  %v2143_v9 = vadd.f32 %v2142_v7, %v1853_v5  ;;  %v1855_v10 = vpop.f32.mrb[123].mxu1  ;;  %v2144_v11 = vpop.f32.mrb[123].mxu0 }
 0x307   :  { %2326 = vst [vmem:[#allocation2 + $0x160] sm:$0xff] %v2262_v8  ;;  %v2263_v12 = vadd.f32 %v2143_v9, %v853_v6  ;;  %v862_v6 = vld [vmem:[#allocation2 + $0x1b0] sm:$0xff] }
 0x309   :  { %2327 = vst [vmem:[#allocation2 + $0x168] sm:$0xff] %v2263_v12  ;;  %v863_v12 = vld [vmem:[#allocation2 + $0x1b8] sm:$0xff] }
 0x30a   :  { %v1858_v13 = vpop.f32.mrb[124].mxu1  ;;  %v2147_v15 = vpop.f32.mrb[124].mxu0 }
 0x30b   :  { %v2148_v16 = vadd.f32 %v2147_v15, %v1858_v13  ;;  %v1860_v17 = vpop.f32.mrb[125].mxu1  ;;  %v2149_v18 = vpop.f32.mrb[125].mxu0 }
 0x30c   :  { %v1861_v19 = vpop.f32.mrb[126].mxu1  ;;  %v2150_v21 = vpop.f32.mrb[126].mxu0 }
 0x30d   :  { %v2264_v41 = vadd.f32 %v2148_v16, %v854_v14  ;;  %v2151_v22 = vadd.f32 %v2150_v21, %v1861_v19  ;;  %v1863_v23 = vpop.f32.mrb[127].mxu1  ;;  %v2152_v24 = vpop.f32.mrb[127].mxu0 }
 0x30f   :  { %2328 = vst [vmem:[#allocation2 + $0x170] sm:$0xff] %v2264_v41  ;;  %v2265_v25 = vadd.f32 %v2151_v22, %v855_v20  ;;  %v864_v20 = vld [vmem:[#allocation2 + $0x1c0] sm:$0xff] }
 0x311   :  { %2329 = vst [vmem:[#allocation2 + $0x178] sm:$0xff] %v2265_v25  ;;  %v865_v25 = vld [vmem:[#allocation2 + $0x1c8] sm:$0xff] }
 0x312   :  { %v1866_v26 = vpop.f32.mrb[128].mxu1  ;;  %v2155_v28 = vpop.f32.mrb[128].mxu0 }
 0x313   :  { %v2156_v29 = vadd.f32 %v2155_v28, %v1866_v26  ;;  %v1868_v30 = vpop.f32.mrb[129].mxu1  ;;  %v2157_v31 = vpop.f32.mrb[129].mxu0 }
 0x314   :  { %v1869_v32 = vpop.f32.mrb[130].mxu1  ;;  %v2158_v34 = vpop.f32.mrb[130].mxu0 }
 0x315   :  { %v2266_v35 = vadd.f32 %v2156_v29, %v856_v27  ;;  %v2159_v36 = vadd.f32 %v2158_v34, %v1869_v32  ;;  %v1871_v37 = vpop.f32.mrb[131].mxu1  ;;  %v2160_v38 = vpop.f32.mrb[131].mxu0 }
 0x317   :  { %2330 = vst [vmem:[#allocation2 + $0x180] sm:$0xff] %v2266_v35  ;;  %v2267_v39 = vadd.f32 %v2159_v36, %v857_v33  ;;  %v866_v33 = vld [vmem:[#allocation2 + $0x1d0] sm:$0xff] }
 0x319   :  { %2331 = vst [vmem:[#allocation2 + $0x188] sm:$0xff] %v2267_v39  ;;  %v867_v39 = vld [vmem:[#allocation2 + $0x1d8] sm:$0xff] }
 0x31a   :  { %v1874_v40 = vpop.f32.mrb[132].mxu1  ;;  %v2163_v43 = vpop.f32.mrb[132].mxu0 }
 0x31b   :  { %v2164_v44 = vadd.f32 %v2163_v43, %v1874_v40  ;;  %v1876_v45 = vpop.f32.mrb[133].mxu1  ;;  %v2165_v46 = vpop.f32.mrb[133].mxu0 }
 0x31c   :  { %v1877_v47 = vpop.f32.mrb[134].mxu1  ;;  %v2166_v49 = vpop.f32.mrb[134].mxu0 }
 0x31d   :  { %v2268_v50 = vadd.f32 %v2164_v44, %v858_v42  ;;  %v2167_v51 = vadd.f32 %v2166_v49, %v1877_v47  ;;  %v1879_v52 = vpop.f32.mrb[135].mxu1  ;;  %v2168_v53 = vpop.f32.mrb[135].mxu0 }
 0x31f   :  { %2332 = vst [vmem:[#allocation2 + $0x190] sm:$0xff] %v2268_v50  ;;  %v2269_v54 = vadd.f32 %v2167_v51, %v859_v48  ;;  %v868_v48 = vld [vmem:[#allocation2 + $0x1e0] sm:$0xff] }
 0x321   :  { %2333 = vst [vmem:[#allocation2 + $0x198] sm:$0xff] %v2269_v54  ;;  %v869_v54 = vld [vmem:[#allocation2 + $0x1e8] sm:$0xff] }
 0x322   :  { %v1882_v55 = vpop.f32.mrb[136].mxu1  ;;  %v2171_v57 = vpop.f32.mrb[136].mxu0 }
 0x323   :  { %v2172_v58 = vadd.f32 %v2171_v57, %v1882_v55  ;;  %v1884_v59 = vpop.f32.mrb[137].mxu1  ;;  %v2173_v60 = vpop.f32.mrb[137].mxu0 }
 0x324   :  { %v1885_v61 = vpop.f32.mrb[138].mxu1  ;;  %v2174_v63 = vpop.f32.mrb[138].mxu0 }
 0x325   :  { %v2270_v0 = vadd.f32 %v2172_v58, %v860_v56  ;;  %v2175_v1 = vadd.f32 %v2174_v63, %v1885_v61  ;;  %v1887_v2 = vpop.f32.mrb[139].mxu1  ;;  %v2176_v3 = vpop.f32.mrb[139].mxu0 }
 0x327   :  { %2334 = vst [vmem:[#allocation2 + $0x1a0] sm:$0xff] %v2270_v0  ;;  %v2271_v4 = vadd.f32 %v2175_v1, %v861_v62  ;;  %v870_v62 = vld [vmem:[#allocation2 + $0x1f0] sm:$0xff] }
 0x329   :  { %2335 = vst [vmem:[#allocation2 + $0x1a8] sm:$0xff] %v2271_v4  ;;  %v871_v4 = vld [vmem:[#allocation2 + $0x1f8] sm:$0xff] }
 0x32a   :  { %v1890_v5 = vpop.f32.mrb[140].mxu1  ;;  %v2179_v7 = vpop.f32.mrb[140].mxu0 }
 0x32b   :  { %v2180_v8 = vadd.f32 %v2179_v7, %v1890_v5  ;;  %v1892_v9 = vpop.f32.mrb[141].mxu1  ;;  %v2181_v10 = vpop.f32.mrb[141].mxu0 }
 0x32c   :  { %v1893_v11 = vpop.f32.mrb[142].mxu1  ;;  %v2182_v13 = vpop.f32.mrb[142].mxu0 }
 0x32d   :  { %v2272_v14 = vadd.f32 %v2180_v8, %v862_v6  ;;  %v2183_v15 = vadd.f32 %v2182_v13, %v1893_v11  ;;  %v1895_v16 = vpop.f32.mrb[143].mxu1  ;;  %v2184_v17 = vpop.f32.mrb[143].mxu0 }
 0x32f   :  { %2336 = vst [vmem:[#allocation2 + $0x1b0] sm:$0xff] %v2272_v14  ;;  %v2273_v18 = vadd.f32 %v2183_v15, %v863_v12 }
 0x331   :  { %2337 = vst [vmem:[#allocation2 + $0x1b8] sm:$0xff] %v2273_v18 }
 0x332   :  { %v1898_v19 = vpop.f32.mrb[144].mxu1  ;;  %v2187_v21 = vpop.f32.mrb[144].mxu0 }
 0x333   :  { %v2188_v41 = vadd.f32 %v2187_v21, %v1898_v19  ;;  %v1900_v22 = vpop.f32.mrb[145].mxu1  ;;  %v2189_v23 = vpop.f32.mrb[145].mxu0 }
 0x334   :  { %v1901_v24 = vpop.f32.mrb[146].mxu1  ;;  %v2190_v26 = vpop.f32.mrb[146].mxu0 }
 0x335   :  { %v2274_v27 = vadd.f32 %v2188_v41, %v864_v20  ;;  %v2191_v28 = vadd.f32 %v2190_v26, %v1901_v24  ;;  %v1903_v29 = vpop.f32.mrb[147].mxu1  ;;  %v2192_v30 = vpop.f32.mrb[147].mxu0 }
 0x337   :  { %2338 = vst [vmem:[#allocation2 + $0x1c0] sm:$0xff] %v2274_v27  ;;  %v2275_v31 = vadd.f32 %v2191_v28, %v865_v25 }
 0x339   :  { %2339 = vst [vmem:[#allocation2 + $0x1c8] sm:$0xff] %v2275_v31 }
 0x33a   :  { %v1906_v32 = vpop.f32.mrb[148].mxu1  ;;  %v2195_v34 = vpop.f32.mrb[148].mxu0 }
 0x33b   :  { %v2196_v35 = vadd.f32 %v2195_v34, %v1906_v32  ;;  %v1908_v36 = vpop.f32.mrb[149].mxu1  ;;  %v2197_v37 = vpop.f32.mrb[149].mxu0 }
 0x33c   :  { %v1909_v38 = vpop.f32.mrb[150].mxu1  ;;  %v2198_v40 = vpop.f32.mrb[150].mxu0 }
 0x33d   :  { %v2276_v42 = vadd.f32 %v2196_v35, %v866_v33  ;;  %v2199_v43 = vadd.f32 %v2198_v40, %v1909_v38  ;;  %v1911_v44 = vpop.f32.mrb[151].mxu1  ;;  %v2200_v45 = vpop.f32.mrb[151].mxu0 }
 0x33f   :  { %2340 = vst [vmem:[#allocation2 + $0x1d0] sm:$0xff] %v2276_v42  ;;  %v2277_v46 = vadd.f32 %v2199_v43, %v867_v39 }
 0x341   :  { %2341 = vst [vmem:[#allocation2 + $0x1d8] sm:$0xff] %v2277_v46 }
 0x342   :  { %v1914_v47 = vpop.f32.mrb[152].mxu1  ;;  %v2203_v49 = vpop.f32.mrb[152].mxu0 }
 0x343   :  { %v2204_v50 = vadd.f32 %v2203_v49, %v1914_v47  ;;  %v1916_v51 = vpop.f32.mrb[153].mxu1  ;;  %v2205_v52 = vpop.f32.mrb[153].mxu0 }
 0x344   :  { %v1917_v53 = vpop.f32.mrb[154].mxu1  ;;  %v2206_v55 = vpop.f32.mrb[154].mxu0 }
 0x345   :  { %v2278_v56 = vadd.f32 %v2204_v50, %v868_v48  ;;  %v2207_v57 = vadd.f32 %v2206_v55, %v1917_v53  ;;  %v1919_v58 = vpop.f32.mrb[155].mxu1  ;;  %v2208_v59 = vpop.f32.mrb[155].mxu0 }
 0x347   :  { %2342 = vst [vmem:[#allocation2 + $0x1e0] sm:$0xff] %v2278_v56  ;;  %v2279_v60 = vadd.f32 %v2207_v57, %v869_v54 }
 0x349   :  { %2343 = vst [vmem:[#allocation2 + $0x1e8] sm:$0xff] %v2279_v60 }
 0x34a   :  { %v1922_v61 = vpop.f32.mrb[156].mxu1  ;;  %v2211_v63 = vpop.f32.mrb[156].mxu0 }
 0x34b   :  { %v2212_v0 = vadd.f32 %v2211_v63, %v1922_v61  ;;  %v1924_v1 = vpop.f32.mrb[157].mxu1  ;;  %v2213_v2 = vpop.f32.mrb[157].mxu0 }
 0x34c   :  { %v1925_v3 = vpop.f32.mrb[158].mxu1  ;;  %v2214_v5 = vpop.f32.mrb[158].mxu0 }
 0x34d   :  { %v2280_v6 = vadd.f32 %v2212_v0, %v870_v62  ;;  %v2215_v7 = vadd.f32 %v2214_v5, %v1925_v3  ;;  %v1927_v8 = vpop.f32.mrb[159].mxu1  ;;  %v2216_v9 = vpop.f32.mrb[159].mxu0 }
 0x34f   :  { %2344 = vst [vmem:[#allocation2 + $0x1f0] sm:$0xff] %v2280_v6  ;;  %v2281_v10 = vadd.f32 %v2215_v7, %v871_v4 }
 0x351   :  { %2345 = vst [vmem:[#allocation2 + $0x1f8] sm:$0xff] %v2281_v10 }
 0x352 PF:  { %v2349_v11 = vld [vmem:[#allocation2] sm:$0xff]  ;;  %v2350_v12 = vld [vmem:[#allocation2 + $0x8] sm:$0xff]  ;;  %v2351_v16 = vld [vmem:[#allocation2 + $0x10] sm:$0xff] }
 0x353   :  { %v4194_v13 = vld [vmem:[%s4280_s5] ss:$0 sm:$0xff]  ;;  %v2352_v17 = vld [vmem:[#allocation2 + $0x18] sm:$0xff]  ;;  %v2354_v21 = vld [vmem:[#allocation2 + $0x28] sm:$0xff]  ;;  %s3998_s5 = smov [#allocation12]  }
 0x354   :  { %v2420_v14 = vadd.f32 %v4194_v13, %v2349_v11  ;;  %v2421_v15 = vadd.f32 %v4194_v13, %v2350_v12  ;;  %v2353_v18 = vld [vmem:[#allocation2 + $0x20] sm:$0xff]  ;;  %v2422_v19 = vadd.f32 %v4194_v13, %v2351_v16  ;;  %v2423_v20 = vadd.f32 %v4194_v13, %v2352_v17  ;;  %v2355_v41 = vld [vmem:[#allocation2 + $0x30] sm:$0xff]  ;;  %v2356_v23 = vld [vmem:[#allocation2 + $0x38] sm:$0xff]  ;;  %s2873_s27 = sshll.u32 %s3998_s5, 4  ;;  %s2874_s27 = int_to_ptr.vmem [resolvable:$true] %s2873_s27 }
 0x355   :  { %v2424_v22 = vadd.f32 %v4194_v13, %v2353_v18  ;;  %v2425_v24 = vadd.f32 %v4194_v13, %v2354_v21  ;;  %v2357_v25 = vld [vmem:[#allocation2 + $0x40] sm:$0xff]  ;;  %v2426_v26 = vadd.f32 %v4194_v13, %v2355_v41  ;;  %v2358_v27 = vld [vmem:[#allocation2 + $0x48] sm:$0xff]  ;;  %v2427_v28 = vadd.f32 %v4194_v13, %v2356_v23  ;;  %v2359_v29 = vld [vmem:[#allocation2 + $0x50] sm:$0xff]  ;;  %s3961_s28 = scalar_lea.vmem %s2874_s27, 4096  ;;  %p3966_p7 = scmp.lt.s32.totalorder %s2874_s27, %s2874_s27 }
 0x356   :  { %3763 = vtanh.f32 %v2420_v14  ;;  %v2428_v30 = vadd.f32 %v4194_v13, %v2357_v25  ;;  %v2360_v31 = vld [vmem:[#allocation2 + $0x58] sm:$0xff]  ;;  %v2429_v32 = vadd.f32 %v4194_v13, %v2358_v27  ;;  %v2361_v33 = vld [vmem:[#allocation2 + $0x60] sm:$0xff]  ;;  %v2430_v34 = vadd.f32 %v4194_v13, %v2359_v29  ;;  %v2362_v35 = vld [vmem:[#allocation2 + $0x68] sm:$0xff]  ;;  %p3962_p6 = scmp.ne.s32.totalorder %s2874_s27, %s3961_s28  ;;  %p3967_p8 = scmp.lt.s32.totalorder %s3961_s28, %s3961_s28 }
 0x357   :  { %3765 = vtanh.f32 %v2421_v15  ;;  %v2431_v36 = vadd.f32 %v4194_v13, %v2360_v31  ;;  %v2363_v37 = vld [vmem:[#allocation2 + $0x70] sm:$0xff]  ;;  %v2432_v38 = vadd.f32 %v4194_v13, %v2361_v33  ;;  %v2364_v39 = vld [vmem:[#allocation2 + $0x78] sm:$0xff]  ;;  %v2433_v40 = vadd.f32 %v4194_v13, %v2362_v35  ;;  %v2365_v42 = vld [vmem:[#allocation2 + $0x80] sm:$0xff] }
 0x358   :  { %3767 = vtanh.f32 %v2422_v19  ;;  %v2434_v44 = vadd.f32 %v4194_v13, %v2363_v37  ;;  %v2366_v45 = vld [vmem:[#allocation2 + $0x88] sm:$0xff]  ;;  %v2435_v47 = vadd.f32 %v4194_v13, %v2364_v39  ;;  %v2367_v48 = vld [vmem:[#allocation2 + $0x90] sm:$0xff]  ;;  %v2436_v51 = vadd.f32 %v4194_v13, %v2365_v42  ;;  %v2368_v52 = vld [vmem:[#allocation2 + $0x98] sm:$0xff]  ;;  %p3968_p9 = por %p3967_p8, %p3966_p7 }
 0x359   :  { %3769 = vtanh.f32 %v2423_v20  ;;  %v2437_v54 = vadd.f32 %v4194_v13, %v2366_v45  ;;  %v2369_v55 = vld [vmem:[#allocation2 + $0xa0] sm:$0xff]  ;;  %v2438_v58 = vadd.f32 %v4194_v13, %v2367_v48  ;;  %v2370_v59 = vld [vmem:[#allocation2 + $0xa8] sm:$0xff]  ;;  %v2439_v61 = vadd.f32 %v4194_v13, %v2368_v52  ;;  %v2371_v62 = vld [vmem:[#allocation2 + $0xb0] sm:$0xff] }
 0x35a   :  { %3771 = vtanh.f32 %v2424_v22  ;;  %v2440_v1 = vadd.f32 %v4194_v13, %v2369_v55  ;;  %v2372_v2 = vld [vmem:[#allocation2 + $0xb8] sm:$0xff]  ;;  %v2441_v4 = vadd.f32 %v4194_v13, %v2370_v59  ;;  %v2373_v5 = vld [vmem:[#allocation2 + $0xc0] sm:$0xff]  ;;  %v2442_v8 = vadd.f32 %v4194_v13, %v2371_v62  ;;  %v2374_v9 = vld [vmem:[#allocation2 + $0xc8] sm:$0xff]  ;;  %p3969_p10 = pnand %p3968_p9, %p3962_p6 }
 0x35b   :  { %3773 = vtanh.f32 %v2425_v24  ;;  %v2443_v11 = vadd.f32 %v4194_v13, %v2372_v2  ;;  %v2375_v12 = vld [vmem:[#allocation2 + $0xd0] sm:$0xff]  ;;  %v2444_v16 = vadd.f32 %v4194_v13, %v2373_v5  ;;  %v2376_v17 = vld [vmem:[#allocation2 + $0xd8] sm:$0xff]  ;;  %v2445_v19 = vadd.f32 %v4194_v13, %v2374_v9  ;;  %v2377_v20 = vld [vmem:[#allocation2 + $0xe0] sm:$0xff] }
 0x35c   :  { %3775 = vtanh.f32 %v2426_v26  ;;  %v2446_v22 = vadd.f32 %v4194_v13, %v2375_v12  ;;  %v2378_v23 = vld [vmem:[#allocation2 + $0xe8] sm:$0xff]  ;;  %v2447_v25 = vadd.f32 %v4194_v13, %v2376_v17  ;;  %v2379_v26 = vld [vmem:[#allocation2 + $0xf0] sm:$0xff]  ;;  %v2448_v29 = vadd.f32 %v4194_v13, %v2377_v20  ;;  %v2381_v33 = vld [vmem:[#allocation2 + $0x100] sm:$0xff] }
 0x35d   :  { %3777 = vtanh.f32 %v2427_v28  ;;  %v2382_v37 = vld [vmem:[#allocation2 + $0x108] sm:$0xff]  ;;  %v2384_v45 = vld [vmem:[#allocation2 + $0x118] sm:$0xff]  ;;  %v2385_v48 = vld [vmem:[#allocation2 + $0x120] sm:$0xff] }
 0x35e   :  { %3779 = vtanh.f32 %v2428_v30  ;;  %v2380_v30 = vld [vmem:[#allocation2 + $0xf8] sm:$0xff]  ;;  %v2386_v52 = vld [vmem:[#allocation2 + $0x128] sm:$0xff]  ;;  %v2387_v55 = vld [vmem:[#allocation2 + $0x130] sm:$0xff] }
 0x35f   :  { %3781 = vtanh.f32 %v2429_v32  ;;  %v2449_v32 = vadd.f32 %v4194_v13, %v2378_v23  ;;  %v2451_v39 = vadd.f32 %v4194_v13, %v2380_v30  ;;  %v2388_v59 = vld [vmem:[#allocation2 + $0x138] sm:$0xff]  ;;  %v2389_v62 = vld [vmem:[#allocation2 + $0x140] sm:$0xff]  ;;  %v2390_v2 = vld [vmem:[#allocation2 + $0x148] sm:$0xff] }
 0x360   :  { %v3764_v43 = vpop.eup %3763  ;;  %3783 = vtanh.f32 %v2430_v34  ;;  %v2391_v5 = vld [vmem:[#allocation2 + $0x150] sm:$0xff]  ;;  %v2392_v9 = vld [vmem:[#allocation2 + $0x158] sm:$0xff]  ;;  %v2393_v12 = vld [vmem:[#allocation2 + $0x160] sm:$0xff] }
 0x361   :  { %v3766_v46 = vpop.eup %3765  ;;  %3785 = vtanh.f32 %v2431_v36  ;;  %v2450_v36 = vadd.f32 %v4194_v13, %v2379_v26  ;;  %v2394_v17 = vld [vmem:[#allocation2 + $0x168] sm:$0xff]  ;;  %v2395_v20 = vld [vmem:[#allocation2 + $0x170] sm:$0xff]  ;;  %v2396_v23 = vld [vmem:[#allocation2 + $0x178] sm:$0xff] }
 0x362   :  { %v3768_v49 = vpop.eup %3767  ;;  %v3197_v50 = vpack.c.bf16 %v3766_v46, %v3764_v43  ;;  %3787 = vtanh.f32 %v2432_v38  ;;  %v2397_v26 = vld [vmem:[#allocation2 + $0x180] sm:$0xff]  ;;  %v2398_v30 = vld [vmem:[#allocation2 + $0x188] sm:$0xff] }
 0x363   :  { %v3770_v53 = vpop.eup %3769  ;;  %3789 = vtanh.f32 %v2433_v40  ;;  %v2383_v40 = vld [vmem:[#allocation2 + $0x110] sm:$0xff] }
 0x364   :  { %v3772_v56 = vpop.eup %3771  ;;  %3198 = vst [vmem:[#allocation12] sm:$0xff] %v3197_v50   ;;  %v3202_v57 = vpack.c.bf16 %v3770_v53, %v3768_v49  ;;  %3791 = vtanh.f32 %v2434_v44  ;;  %v2452_v44 = vadd.f32 %v4194_v13, %v2381_v33  ;;  %v2399_v33 = vld [vmem:[#allocation2 + $0x190] sm:$0xff] }
 0x365   :  { %v3774_v60 = vpop.eup %3773  ;;  %3793 = vtanh.f32 %v2435_v47  ;;  %v2453_v47 = vadd.f32 %v4194_v13, %v2382_v37  ;;  %v2400_v37 = vld [vmem:[#allocation2 + $0x198] sm:$0xff] }
 0x366   :  { %v3776_v63 = vpop.eup %3775  ;;  %3354 = vst [vmem:[#allocation12 + $0x8] sm:$0xff] %v3202_v57   ;;  %v3207_v0 = vpack.c.bf16 %v3774_v60, %v3772_v56  ;;  %3795 = vtanh.f32 %v2436_v51  ;;  %v2454_v51 = vadd.f32 %v4194_v13, %v2383_v40  ;;  %v2401_v40 = vld [vmem:[#allocation2 + $0x1a0] sm:$0xff] }
 0x367   :  { %v3778_v3 = vpop.eup %3777  ;;  %3797 = vtanh.f32 %v2437_v54  ;;  %v2455_v54 = vadd.f32 %v4194_v13, %v2384_v45  ;;  %v2402_v45 = vld [vmem:[#allocation2 + $0x1a8] sm:$0xff] }
 0x368   :  { %v3780_v6 = vpop.eup %3779  ;;  %3355 = vst [vmem:[#allocation12 + $0x10] sm:$0xff] %v3207_v0   ;;  %v3212_v7 = vpack.c.bf16 %v3778_v3, %v3776_v63  ;;  %3799 = vtanh.f32 %v2438_v58  ;;  %v2456_v58 = vadd.f32 %v4194_v13, %v2385_v48  ;;  %v2403_v48 = vld [vmem:[#allocation2 + $0x1b0] sm:$0xff] }
 0x369   :  { %v3782_v10 = vpop.eup %3781  ;;  %3801 = vtanh.f32 %v2439_v61  ;;  %v2457_v61 = vadd.f32 %v4194_v13, %v2386_v52  ;;  %v2404_v52 = vld [vmem:[#allocation2 + $0x1b8] sm:$0xff] }
 0x36a   :  { %v3784_v14 = vpop.eup %3783  ;;  %3356 = vst [vmem:[#allocation12 + $0x18] sm:$0xff] %v3212_v7   ;;  %v3217_v15 = vpack.c.bf16 %v3782_v10, %v3780_v6  ;;  %3803 = vtanh.f32 %v2440_v1  ;;  %v2458_v1 = vadd.f32 %v4194_v13, %v2387_v55  ;;  %v2405_v55 = vld [vmem:[#allocation2 + $0x1c0] sm:$0xff] }
 0x36b   :  { %v3786_v18 = vpop.eup %3785  ;;  %3805 = vtanh.f32 %v2441_v4  ;;  %v2459_v4 = vadd.f32 %v4194_v13, %v2388_v59  ;;  %v2406_v59 = vld [vmem:[#allocation2 + $0x1c8] sm:$0xff] }
 0x36c   :  { %v3788_v21 = vpop.eup %3787  ;;  %3357 = vst [vmem:[#allocation12 + $0x20] sm:$0xff] %v3217_v15   ;;  %v3222_v41 = vpack.c.bf16 %v3786_v18, %v3784_v14  ;;  %3807 = vtanh.f32 %v2442_v8  ;;  %v2460_v8 = vadd.f32 %v4194_v13, %v2389_v62  ;;  %v2407_v62 = vld [vmem:[#allocation2 + $0x1d0] sm:$0xff] }
 0x36d   :  { %v3790_v24 = vpop.eup %3789  ;;  %3809 = vtanh.f32 %v2443_v11  ;;  %v2461_v11 = vadd.f32 %v4194_v13, %v2390_v2  ;;  %v2408_v2 = vld [vmem:[#allocation2 + $0x1d8] sm:$0xff] }
 0x36e   :  { %v3792_v27 = vpop.eup %3791  ;;  %3358 = vst [vmem:[#allocation12 + $0x28] sm:$0xff] %v3222_v41   ;;  %v3227_v28 = vpack.c.bf16 %v3790_v24, %v3788_v21  ;;  %3811 = vtanh.f32 %v2444_v16  ;;  %v2462_v16 = vadd.f32 %v4194_v13, %v2391_v5  ;;  %v2409_v5 = vld [vmem:[#allocation2 + $0x1e0] sm:$0xff] }
 0x36f   :  { %v3794_v31 = vpop.eup %3793  ;;  %3813 = vtanh.f32 %v2445_v19  ;;  %v2463_v19 = vadd.f32 %v4194_v13, %v2392_v9  ;;  %v2410_v9 = vld [vmem:[#allocation2 + $0x1e8] sm:$0xff] }
 0x370   :  { %v3796_v34 = vpop.eup %3795  ;;  %3359 = vst [vmem:[#allocation12 + $0x30] sm:$0xff] %v3227_v28   ;;  %v3232_v35 = vpack.c.bf16 %v3794_v31, %v3792_v27  ;;  %3815 = vtanh.f32 %v2446_v22  ;;  %v2464_v22 = vadd.f32 %v4194_v13, %v2393_v12  ;;  %v2411_v12 = vld [vmem:[#allocation2 + $0x1f0] sm:$0xff] }
 0x371   :  { %v3798_v38 = vpop.eup %3797  ;;  %3817 = vtanh.f32 %v2447_v25  ;;  %v2465_v25 = vadd.f32 %v4194_v13, %v2394_v17  ;;  %v2412_v17 = vld [vmem:[#allocation2 + $0x1f8] sm:$0xff] }
 0x372   :  { %v3800_v42 = vpop.eup %3799  ;;  %3360 = vst [vmem:[#allocation12 + $0x38] sm:$0xff] %v3232_v35   ;;  %v3237_v43 = vpack.c.bf16 %v3798_v38, %v3796_v34  ;;  %3819 = vtanh.f32 %v2448_v29  ;;  %v2466_v29 = vadd.f32 %v4194_v13, %v2395_v20 }
 0x373   :  { %v3802_v46 = vpop.eup %3801  ;;  %3821 = vtanh.f32 %v2449_v32  ;;  %v2467_v32 = vadd.f32 %v4194_v13, %v2396_v23  ;;  %v2483_v23 = vadd.f32 %v4194_v13, %v2412_v17 }
 0x374   :  { %v3804_v49 = vpop.eup %3803  ;;  %3361 = vst [vmem:[#allocation12 + $0x40] sm:$0xff] %v3237_v43   ;;  %v3242_v50 = vpack.c.bf16 %v3802_v46, %v3800_v42  ;;  %3823 = vtanh.f32 %v2450_v36  ;;  %v2468_v36 = vadd.f32 %v4194_v13, %v2397_v26 }
 0x375   :  { %v3806_v53 = vpop.eup %3805  ;;  %3825 = vtanh.f32 %v2451_v39  ;;  %v2469_v39 = vadd.f32 %v4194_v13, %v2398_v30 }
 0x376   :  { %v3808_v56 = vpop.eup %3807  ;;  %3362 = vst [vmem:[#allocation12 + $0x48] sm:$0xff] %v3242_v50   ;;  %v3247_v57 = vpack.c.bf16 %v3806_v53, %v3804_v49  ;;  %3827 = vtanh.f32 %v2452_v44  ;;  %v2470_v44 = vadd.f32 %v4194_v13, %v2399_v33 }
 0x377   :  { %v3810_v60 = vpop.eup %3809  ;;  %3829 = vtanh.f32 %v2453_v47  ;;  %v2471_v47 = vadd.f32 %v4194_v13, %v2400_v37 }
 0x378   :  { %v3812_v63 = vpop.eup %3811  ;;  %3363 = vst [vmem:[#allocation12 + $0x50] sm:$0xff] %v3247_v57   ;;  %v3252_v0 = vpack.c.bf16 %v3810_v60, %v3808_v56  ;;  %3831 = vtanh.f32 %v2454_v51  ;;  %v2472_v51 = vadd.f32 %v4194_v13, %v2401_v40 }
 0x379   :  { %v3814_v3 = vpop.eup %3813  ;;  %3833 = vtanh.f32 %v2455_v54  ;;  %v2473_v54 = vadd.f32 %v4194_v13, %v2402_v45 }
 0x37a   :  { %v3816_v6 = vpop.eup %3815  ;;  %3364 = vst [vmem:[#allocation12 + $0x58] sm:$0xff] %v3252_v0   ;;  %v3257_v7 = vpack.c.bf16 %v3814_v3, %v3812_v63  ;;  %3835 = vtanh.f32 %v2456_v58  ;;  %v2474_v58 = vadd.f32 %v4194_v13, %v2403_v48 }
 0x37b   :  { %v3818_v10 = vpop.eup %3817  ;;  %3837 = vtanh.f32 %v2457_v61  ;;  %v2475_v61 = vadd.f32 %v4194_v13, %v2404_v52 }
 0x37c   :  { %v3820_v14 = vpop.eup %3819  ;;  %3365 = vst [vmem:[#allocation12 + $0x60] sm:$0xff] %v3257_v7   ;;  %v3262_v15 = vpack.c.bf16 %v3818_v10, %v3816_v6  ;;  %3839 = vtanh.f32 %v2458_v1  ;;  %v2476_v1 = vadd.f32 %v4194_v13, %v2405_v55 }
 0x37d   :  { %v3822_v18 = vpop.eup %3821  ;;  %3841 = vtanh.f32 %v2459_v4  ;;  %v2477_v4 = vadd.f32 %v4194_v13, %v2406_v59 }
 0x37e   :  { %v3824_v21 = vpop.eup %3823  ;;  %3366 = vst [vmem:[#allocation12 + $0x68] sm:$0xff] %v3262_v15   ;;  %v3267_v41 = vpack.c.bf16 %v3822_v18, %v3820_v14  ;;  %3843 = vtanh.f32 %v2460_v8  ;;  %v2478_v8 = vadd.f32 %v4194_v13, %v2407_v62 }
 0x37f   :  { %v3826_v24 = vpop.eup %3825  ;;  %3845 = vtanh.f32 %v2461_v11  ;;  %v2479_v11 = vadd.f32 %v4194_v13, %v2408_v2 }
 0x380   :  { %v3828_v27 = vpop.eup %3827  ;;  %3367 = vst [vmem:[#allocation12 + $0x70] sm:$0xff] %v3267_v41   ;;  %v3272_v28 = vpack.c.bf16 %v3826_v24, %v3824_v21  ;;  %3847 = vtanh.f32 %v2462_v16  ;;  %v2480_v16 = vadd.f32 %v4194_v13, %v2409_v5  ;;  %v2482_v41 = vadd.f32 %v4194_v13, %v2411_v12 }
 0x381   :  { %v3830_v31 = vpop.eup %3829  ;;  %3849 = vtanh.f32 %v2463_v19  ;;  %v2481_v19 = vadd.f32 %v4194_v13, %v2410_v9 }
 0x382   :  { %v3832_v34 = vpop.eup %3831  ;;  %3368 = vst [vmem:[#allocation12 + $0x78] sm:$0xff] %v3272_v28   ;;  %v3277_v35 = vpack.c.bf16 %v3830_v31, %v3828_v27  ;;  %3851 = vtanh.f32 %v2464_v22 }
 0x383   :  { %v3834_v38 = vpop.eup %3833  ;;  %3853 = vtanh.f32 %v2465_v25 }
 0x384   :  { %v3836_v42 = vpop.eup %3835  ;;  %3369 = vst [vmem:[#allocation12 + $0x80] sm:$0xff] %v3277_v35   ;;  %v3282_v43 = vpack.c.bf16 %v3834_v38, %v3832_v34  ;;  %3855 = vtanh.f32 %v2466_v29 }
 0x385   :  { %v3838_v46 = vpop.eup %3837  ;;  %3857 = vtanh.f32 %v2467_v32 }
 0x386   :  { %v3840_v49 = vpop.eup %3839  ;;  %3370 = vst [vmem:[#allocation12 + $0x88] sm:$0xff] %v3282_v43   ;;  %v3287_v50 = vpack.c.bf16 %v3838_v46, %v3836_v42  ;;  %3859 = vtanh.f32 %v2468_v36 }
 0x387   :  { %v3842_v53 = vpop.eup %3841  ;;  %3861 = vtanh.f32 %v2469_v39 }
 0x388   :  { %v3844_v56 = vpop.eup %3843  ;;  %3371 = vst [vmem:[#allocation12 + $0x90] sm:$0xff] %v3287_v50   ;;  %v3292_v57 = vpack.c.bf16 %v3842_v53, %v3840_v49  ;;  %3863 = vtanh.f32 %v2470_v44 }
 0x389   :  { %v3846_v60 = vpop.eup %3845  ;;  %3865 = vtanh.f32 %v2471_v47 }
 0x38a   :  { %v3848_v63 = vpop.eup %3847  ;;  %3372 = vst [vmem:[#allocation12 + $0x98] sm:$0xff] %v3292_v57   ;;  %v3297_v0 = vpack.c.bf16 %v3846_v60, %v3844_v56  ;;  %3867 = vtanh.f32 %v2472_v51 }
 0x38b   :  { %v3850_v3 = vpop.eup %3849  ;;  %3869 = vtanh.f32 %v2473_v54 }
 0x38c   :  { %v3852_v6 = vpop.eup %3851  ;;  %3373 = vst [vmem:[#allocation12 + $0xa0] sm:$0xff] %v3297_v0   ;;  %v3302_v7 = vpack.c.bf16 %v3850_v3, %v3848_v63  ;;  %3871 = vtanh.f32 %v2474_v58 }
 0x38d   :  { %v3854_v10 = vpop.eup %3853  ;;  %3873 = vtanh.f32 %v2475_v61 }
 0x38e   :  { %v3856_v14 = vpop.eup %3855  ;;  %3374 = vst [vmem:[#allocation12 + $0xa8] sm:$0xff] %v3302_v7   ;;  %v3307_v15 = vpack.c.bf16 %v3854_v10, %v3852_v6  ;;  %3875 = vtanh.f32 %v2476_v1 }
 0x38f   :  { %v3858_v18 = vpop.eup %3857  ;;  %3877 = vtanh.f32 %v2477_v4 }
 0x390   :  { %v3860_v20 = vpop.eup %3859  ;;  %3375 = vst [vmem:[#allocation12 + $0xb0] sm:$0xff] %v3307_v15   ;;  %v3312_v21 = vpack.c.bf16 %v3858_v18, %v3856_v14  ;;  %3879 = vtanh.f32 %v2478_v8 }
 0x391   :  { %v3862_v22 = vpop.eup %3861  ;;  %3881 = vtanh.f32 %v2479_v11 }
 0x392   :  { %v3864_v24 = vpop.eup %3863  ;;  %3376 = vst [vmem:[#allocation12 + $0xb8] sm:$0xff] %v3312_v21   ;;  %v3317_v25 = vpack.c.bf16 %v3862_v22, %v3860_v20  ;;  %3883 = vtanh.f32 %v2480_v16 }
 0x393   :  { %v3866_v26 = vpop.eup %3865  ;;  %3885 = vtanh.f32 %v2481_v19 }
 0x394   :  { %v3868_v27 = vpop.eup %3867  ;;  %3377 = vst [vmem:[#allocation12 + $0xc0] sm:$0xff] %v3317_v25   ;;  %v3322_v28 = vpack.c.bf16 %v3866_v26, %v3864_v24  ;;  %3887 = vtanh.f32 %v2482_v41 }
 0x395   :  { %v3870_v29 = vpop.eup %3869  ;;  %3889 = vtanh.f32 %v2483_v23 }
 0x396   :  { %v3872_v30 = vpop.eup %3871  ;;  %3378 = vst [vmem:[#allocation12 + $0xc8] sm:$0xff] %v3322_v28   ;;  %v3327_v31 = vpack.c.bf16 %v3870_v29, %v3868_v27 }
 0x397   :  { %v3874_v32 = vpop.eup %3873 }
 0x398   :  { %v3876_v33 = vpop.eup %3875  ;;  %3379 = vst [vmem:[#allocation12 + $0xd0] sm:$0xff] %v3327_v31   ;;  %v3332_v34 = vpack.c.bf16 %v3874_v32, %v3872_v30 }
 0x399   :  { %v3878_v13 = vpop.eup %3877 }
 0x39a   :  { %v3880_v35 = vpop.eup %3879  ;;  %3380 = vst [vmem:[#allocation12 + $0xd8] sm:$0xff] %v3332_v34   ;;  %v3337_v36 = vpack.c.bf16 %v3878_v13, %v3876_v33 }
 0x39b   :  { %v3882_v37 = vpop.eup %3881 }
 0x39c   :  { %v3884_v38 = vpop.eup %3883  ;;  %3381 = vst [vmem:[#allocation12 + $0xe0] sm:$0xff] %v3337_v36   ;;  %v3342_v39 = vpack.c.bf16 %v3882_v37, %v3880_v35 }
 0x39d   :  { %v3886_v40 = vpop.eup %3885 }
 0x39e   :  { %v3888_v42 = vpop.eup %3887  ;;  %3382 = vst [vmem:[#allocation12 + $0xe8] sm:$0xff] %v3342_v39   ;;  %v3347_v43 = vpack.c.bf16 %v3886_v40, %v3884_v38 }
 0x39f   :  { %v3890_v44 = vpop.eup %3889 }
 0x3a0   :  { %3383 = vst [vmem:[#allocation12 + $0xf0] sm:$0xff] %v3347_v43   ;;  %v3352_v45 = vpack.c.bf16 %v3890_v44, %v3888_v42 }
 0x3a2   :  { %3384 = vst [vmem:[#allocation12 + $0xf8] sm:$0xff] %v3352_v45  }
 0x3a3   :  { %3972 = shalt.err (!%p3969_p10)
}
 0x3a4   :  { %s3973_s7 = scalar_lea.hbm %s4281_s6, 4096 }
 0x3a5   :  { %p3974_p11 = scmp.ne.s32.totalorder %s4281_s6, %s3973_s7  ;;  %p3977_p12 = scmp.lt.u32.totalorder %s3973_s7, %s4281_s6 }
 0x3a7   :  { %p3979_p13 = pnand %p3977_p12, %p3974_p11 }
 0x3a9   :  { %3982 = shalt.err (!%p3979_p13)
}
 0x3aa   :  { %2879 = dma.vmem_to_hbm [thread:$0]  %s2874_s27, 4096, %s4281_s6, [#allocation8], %s3990_s23, %s3990_s23, %s3991_s24  }
 0x3ab   :  { %3987 = dma.done.wait [#allocation8], 4096  }
 0x3ac   :  { %3988 = vsyncadd [#allocation8], 4294963200 }
 0x3ad   :  { %2883 = vsyncpa [#allocation7], 1 }
 0x3ae   :  { %2884 = vsyncpa [#allocation10], 1 }
 0x3af   :  { %2885 = vsyncpa [#allocation8], 1 }

</bundles_post_ra>
